<compile_context>
chip_gen: v7x
topology: tpu7x:2x2x1
jax: 0.10.0
libtpu: 0.0.40
codegen_flags: <defaults>
</compile_context>

<pallas_src>
import math

import jax
import jax.numpy as jnp
from jax.experimental import pallas as pl
from jax.experimental.pallas import tpu as pltpu

LANE = 128


def _round_up(v, m):
    return ((v + m - 1) // m) * m


def _make_mlp_kernel(n_layers):
    """Kernel: n_layers Linear layers on lane-packed activations, tanh between."""

    def kernel(x_ref, *refs):
        # refs = (w0, b0, w1, b1, ..., w_{L-1}, b_{L-1}, out_ref)
        out_ref = refs[-1]
        wb = refs[:-1]
        h = x_ref[...]                                    # (tm_p, p*d_in) f32, lane-packed rows
        for li in range(n_layers):
            w = wb[2 * li][...]                           # block-diagonal weight (.., 128)
            b = wb[2 * li + 1][...]                       # (1, 128) tiled bias, broadcasts
            h = jnp.dot(h, w, preferred_element_type=jnp.float32) + b
            if li < n_layers - 1:
                h = jnp.tanh(h)                           # EUP; padded lanes stay exactly 0
        out_ref[...] = h                                  # full 128-lane (unmasked) store

    return kernel


def _pack_geometry(widths):
    """Choose (pack factor p, padded per-layer width wpad) with p*wpad lane-aligned."""
    w_max = max(widths)
    if w_max > LANE:
        return 1, _round_up(w_max, LANE)
    p = 1
    while 2 * p * w_max <= LANE:
        p *= 2
    return p, LANE // p


def mlp_forward(x, params, *, tm=512):
    """Forward pass of the DNN with one pallas_call.

    x:      (N, layers[0]) float32 (any N; padded internally).
    params: list of (W, b) with W: (in, out), b: (1, out)
            (same semantics as torch.nn.Linear: y = x @ W + b).
    tm:     packed-row tile; each packed row carries `p` batch rows.
    """
    n, d_in = x.shape
    n_layers = len(params)
    widths = [d_in] + [w.shape[1] for (w, _) in params]
    d_out = widths[-1]

    p, wpad = _pack_geometry(widths)
    pw = p * wpad                                         # packed hidden lane width (128 here)
    in_w = p * d_in                                       # dense packed input width (8 here)

    # ---- pack weights / biases: pad, block-diagonal x p copies ----
    eye_p = jnp.eye(p, dtype=jnp.float32)
    flat_args = []
    in_specs = [None]                                     # slot 0 = x spec, filled below
    for li, (w, b) in enumerate(params):
        di, do = w.shape
        row_pad = d_in if li == 0 else wpad               # layer 0 consumes the dense input
        w_pad = jnp.zeros((row_pad, wpad), jnp.float32).at[:di, :do].set(w)
        b_pad = jnp.zeros((1, wpad), jnp.float32).at[:, :do].set(b.reshape(1, -1))
        w_blk = jnp.kron(eye_p, w_pad)                    # (p*row_pad, pw) block-diagonal
        b_blk = jnp.tile(b_pad, (1, p))                   # (1, pw)
        flat_args.extend([w_blk, b_blk])
        in_specs.append(pl.BlockSpec(w_blk.shape, lambda i: (0, 0)))   # resident in VMEM
        in_specs.append(pl.BlockSpec((1, pw), lambda i: (0, 0)))       # resident in VMEM

    # ---- pack the batch: rows -> lanes (dense, no per-row zero padding) ----
    tm = max(8, _round_up(tm, 8))
    n_packed_min = pl.cdiv(n, p)
    tm_p = min(tm, _round_up(n_packed_min, 8))
    n_packed = _round_up(n_packed_min, tm_p)
    n_rows = n_packed * p

    x_pad = jnp.zeros((n_rows, d_in), jnp.float32).at[:n, :].set(x)
    x_packed = x_pad.reshape(n_packed, in_w)

    in_specs[0] = pl.BlockSpec((tm_p, in_w), lambda i: (i, 0))
    out_spec = pl.BlockSpec((tm_p, pw), lambda i: (i, 0))

    kernel = _make_mlp_kernel(n_layers)

    out_packed = pl.pallas_call(
        kernel,
        out_shape=jax.ShapeDtypeStruct((n_packed, pw), jnp.float32),
        grid=(n_packed // tm_p,),
        in_specs=in_specs,
        out_specs=out_spec,
        compiler_params=pltpu.CompilerParams(
            dimension_semantics=("parallel",),
        ),
    )(x_packed, *flat_args)

    # ---- unpack: lanes -> rows, drop padding (layout plumbing only) ----
    return out_packed.reshape(n_rows, wpad)[:n, :d_out]


def init_params(layers, key):
    """Deterministic init matching torch.nn.Linear's default (uniform +-1/sqrt(fan_in))."""
    params = []
    for i in range(len(layers) - 1):
        fan_in, fan_out = layers[i], layers[i + 1]
        key, kw, kb = jax.random.split(key, 3)
        bound = 1.0 / math.sqrt(fan_in)
        w = jax.random.uniform(kw, (fan_in, fan_out), jnp.float32, -bound, bound)
        b = jax.random.uniform(kb, (1, fan_out), jnp.float32, -bound, bound)
        params.append((w, b))
    return params


def mlp_reference(x, params):
    """Pure-JAX reference of the same forward pass (for verification)."""
    h = x
    for li, (w, b) in enumerate(params):
        h = h @ w + b
        if li < len(params) - 1:
            h = jnp.tanh(h)
    return h


if __name__ == "__main__":
    # PINN-style network: 2 inputs (x, y), hidden width 32, 2 outputs (u, v).
    layers = [2, 32, 32, 32, 2]
    key = jax.random.PRNGKey(0)
    key, kx = jax.random.split(key)

    n = 3000  # collocation points; not a multiple of anything -> exercises padding,
              # and with tm=512 (x4 lane packing) gives a 2-step grid.
    x = jax.random.normal(kx, (n, layers[0]), jnp.float32)

    params = init_params(layers, key)

    out = mlp_forward(x, params, tm=512)
    out = jax.block_until_ready(out)

    ref = mlp_reference(x, params)
    assert out.shape == (n, layers[-1])
    assert jnp.allclose(out, ref, atol=1e-5, rtol=1e-5)

    print("KERNEL_OK")
</pallas_src>

<mosaic_0001>
module attributes {stable_mosaic.version = 11 : i64} {
  func.func @kernel(%arg0: i32, %arg1: memref<512x8xf32, #tpu.memory_space<vmem>>, %arg2: memref<8x128xf32, #tpu.memory_space<vmem>>, %arg3: memref<1x128xf32, #tpu.memory_space<vmem>>, %arg4: memref<128x128xf32, #tpu.memory_space<vmem>>, %arg5: memref<1x128xf32, #tpu.memory_space<vmem>>, %arg6: memref<128x128xf32, #tpu.memory_space<vmem>>, %arg7: memref<1x128xf32, #tpu.memory_space<vmem>>, %arg8: memref<128x128xf32, #tpu.memory_space<vmem>>, %arg9: memref<1x128xf32, #tpu.memory_space<vmem>>, %arg10: memref<512x128xf32, #tpu.memory_space<vmem>>) attributes {dimension_semantics = [#tpu.dimension_semantics<parallel>], iteration_bounds = array<i64: 2>, scalar_prefetch = 0 : i64, scratch_operands = 0 : i64, tpu.core_type = #tpu.core_type<tc>, window_params = [{transform_indices = @transform_0, window_bounds = array<i64: 512, 8>}, {pipeline_mode = #tpu.pipeline_mode<synchronous>, transform_indices = @transform_1, window_bounds = array<i64: 8, 128>}, {pipeline_mode = #tpu.pipeline_mode<synchronous>, transform_indices = @transform_2, window_bounds = array<i64: 1, 128>}, {pipeline_mode = #tpu.pipeline_mode<synchronous>, transform_indices = @transform_3, window_bounds = array<i64: 128, 128>}, {pipeline_mode = #tpu.pipeline_mode<synchronous>, transform_indices = @transform_4, window_bounds = array<i64: 1, 128>}, {pipeline_mode = #tpu.pipeline_mode<synchronous>, transform_indices = @transform_5, window_bounds = array<i64: 128, 128>}, {pipeline_mode = #tpu.pipeline_mode<synchronous>, transform_indices = @transform_6, window_bounds = array<i64: 1, 128>}, {pipeline_mode = #tpu.pipeline_mode<synchronous>, transform_indices = @transform_7, window_bounds = array<i64: 128, 128>}, {pipeline_mode = #tpu.pipeline_mode<synchronous>, transform_indices = @transform_8, window_bounds = array<i64: 1, 128>}, {transform_indices = @transform_9, window_bounds = array<i64: 512, 128>}]} {
    %c0 = arith.constant 0 : index
    %c0_0 = arith.constant 0 : index
    %0 = vector.load %arg1[%c0, %c0_0] : memref<512x8xf32, #tpu.memory_space<vmem>>, vector<512x8xf32>
    %c0_1 = arith.constant 0 : index
    %c0_2 = arith.constant 0 : index
    %1 = vector.load %arg2[%c0_1, %c0_2] : memref<8x128xf32, #tpu.memory_space<vmem>>, vector<8x128xf32>
    %c0_3 = arith.constant 0 : index
    %c0_4 = arith.constant 0 : index
    %2 = vector.load %arg3[%c0_3, %c0_4] : memref<1x128xf32, #tpu.memory_space<vmem>>, vector<1x128xf32>
    %cst = arith.constant dense<0.000000e+00> : vector<512x128xf32>
    %3 = tpu.matmul %0, %1, %cst {dimension_numbers = #tpu.dot_dimension_numbers<[1], [0], [0], [1], [0, 0, 1, 1], [], []>} : vector<512x8xf32>, vector<8x128xf32>, vector<512x128xf32> -> vector<512x128xf32>
    %4 = vector.broadcast %2 : vector<1x128xf32> to vector<512x128xf32>
    %5 = arith.addf %3, %4 : vector<512x128xf32>
    %6 = math.tanh %5 : vector<512x128xf32>
    %c0_5 = arith.constant 0 : index
    %c0_6 = arith.constant 0 : index
    %7 = vector.load %arg4[%c0_5, %c0_6] : memref<128x128xf32, #tpu.memory_space<vmem>>, vector<128x128xf32>
    %c0_7 = arith.constant 0 : index
    %c0_8 = arith.constant 0 : index
    %8 = vector.load %arg5[%c0_7, %c0_8] : memref<1x128xf32, #tpu.memory_space<vmem>>, vector<1x128xf32>
    %cst_9 = arith.constant dense<0.000000e+00> : vector<512x128xf32>
    %9 = tpu.matmul %6, %7, %cst_9 {dimension_numbers = #tpu.dot_dimension_numbers<[1], [0], [0], [1], [0, 0, 1, 1], [], []>} : vector<512x128xf32>, vector<128x128xf32>, vector<512x128xf32> -> vector<512x128xf32>
    %10 = vector.broadcast %8 : vector<1x128xf32> to vector<512x128xf32>
    %11 = arith.addf %9, %10 : vector<512x128xf32>
    %12 = math.tanh %11 : vector<512x128xf32>
    %c0_10 = arith.constant 0 : index
    %c0_11 = arith.constant 0 : index
    %13 = vector.load %arg6[%c0_10, %c0_11] : memref<128x128xf32, #tpu.memory_space<vmem>>, vector<128x128xf32>
    %c0_12 = arith.constant 0 : index
    %c0_13 = arith.constant 0 : index
    %14 = vector.load %arg7[%c0_12, %c0_13] : memref<1x128xf32, #tpu.memory_space<vmem>>, vector<1x128xf32>
    %cst_14 = arith.constant dense<0.000000e+00> : vector<512x128xf32>
    %15 = tpu.matmul %12, %13, %cst_14 {dimension_numbers = #tpu.dot_dimension_numbers<[1], [0], [0], [1], [0, 0, 1, 1], [], []>} : vector<512x128xf32>, vector<128x128xf32>, vector<512x128xf32> -> vector<512x128xf32>
    %16 = vector.broadcast %14 : vector<1x128xf32> to vector<512x128xf32>
    %17 = arith.addf %15, %16 : vector<512x128xf32>
    %18 = math.tanh %17 : vector<512x128xf32>
    %c0_15 = arith.constant 0 : index
    %c0_16 = arith.constant 0 : index
    %19 = vector.load %arg8[%c0_15, %c0_16] : memref<128x128xf32, #tpu.memory_space<vmem>>, vector<128x128xf32>
    %c0_17 = arith.constant 0 : index
    %c0_18 = arith.constant 0 : index
    %20 = vector.load %arg9[%c0_17, %c0_18] : memref<1x128xf32, #tpu.memory_space<vmem>>, vector<1x128xf32>
    %cst_19 = arith.constant dense<0.000000e+00> : vector<512x128xf32>
    %21 = tpu.matmul %18, %19, %cst_19 {dimension_numbers = #tpu.dot_dimension_numbers<[1], [0], [0], [1], [0, 0, 1, 1], [], []>} : vector<512x128xf32>, vector<128x128xf32>, vector<512x128xf32> -> vector<512x128xf32>
    %22 = vector.broadcast %20 : vector<1x128xf32> to vector<512x128xf32>
    %23 = arith.addf %21, %22 : vector<512x128xf32>
    %c0_20 = arith.constant 0 : index
    %c0_21 = arith.constant 0 : index
    %24 = vector.load %arg10[%c0_20, %c0_21] : memref<512x128xf32, #tpu.memory_space<vmem>>, vector<512x128xf32>
    tpu.vector_store %arg10[%c0_20, %c0_21], %23 {strides = array<i32>} : memref<512x128xf32, #tpu.memory_space<vmem>>, vector<512x128xf32>,
    return
  }
  func.func @transform_0(%arg0: i32) -> (i32, i32) {
    %c0_i32 = arith.constant 0 : i32
    %c0_i32_0 = arith.constant 0 : i32
    return %arg0, %c0_i32 : i32, i32
  }
  func.func @transform_1(%arg0: i32) -> (i32, i32) {
    %c0_i32 = arith.constant 0 : i32
    %c0_i32_0 = arith.constant 0 : i32
    %c0_i32_1 = arith.constant 0 : i32
    return %c0_i32, %c0_i32_0 : i32, i32
  }
  func.func @transform_2(%arg0: i32) -> (i32, i32) {
    %c0_i32 = arith.constant 0 : i32
    %c0_i32_0 = arith.constant 0 : i32
    %c0_i32_1 = arith.constant 0 : i32
    return %c0_i32, %c0_i32_0 : i32, i32
  }
  func.func @transform_3(%arg0: i32) -> (i32, i32) {
    %c0_i32 = arith.constant 0 : i32
    %c0_i32_0 = arith.constant 0 : i32
    %c0_i32_1 = arith.constant 0 : i32
    return %c0_i32, %c0_i32_0 : i32, i32
  }
  func.func @transform_4(%arg0: i32) -> (i32, i32) {
    %c0_i32 = arith.constant 0 : i32
    %c0_i32_0 = arith.constant 0 : i32
    %c0_i32_1 = arith.constant 0 : i32
    return %c0_i32, %c0_i32_0 : i32, i32
  }
  func.func @transform_5(%arg0: i32) -> (i32, i32) {
    %c0_i32 = arith.constant 0 : i32
    %c0_i32_0 = arith.constant 0 : i32
    %c0_i32_1 = arith.constant 0 : i32
    return %c0_i32, %c0_i32_0 : i32, i32
  }
  func.func @transform_6(%arg0: i32) -> (i32, i32) {
    %c0_i32 = arith.constant 0 : i32
    %c0_i32_0 = arith.constant 0 : i32
    %c0_i32_1 = arith.constant 0 : i32
    return %c0_i32, %c0_i32_0 : i32, i32
  }
  func.func @transform_7(%arg0: i32) -> (i32, i32) {
    %c0_i32 = arith.constant 0 : i32
    %c0_i32_0 = arith.constant 0 : i32
    %c0_i32_1 = arith.constant 0 : i32
    return %c0_i32, %c0_i32_0 : i32, i32
  }
  func.func @transform_8(%arg0: i32) -> (i32, i32) {
    %c0_i32 = arith.constant 0 : i32
    %c0_i32_0 = arith.constant 0 : i32
    %c0_i32_1 = arith.constant 0 : i32
    return %c0_i32, %c0_i32_0 : i32, i32
  }
  func.func @transform_9(%arg0: i32) -> (i32, i32) {
    %c0_i32 = arith.constant 0 : i32
    %c0_i32_0 = arith.constant 0 : i32
    return %arg0, %c0_i32 : i32, i32
  }
}

</mosaic_0001>

<bundles_post_ra>
// kernel: tpu_custom_call.1
= control target key start
LH: loop header
LB: loop body
LE: loop exit
PB: predicated region body
PF: predicated region fallthrough
CT: control target
= control target key end

     0   :  { %14 = vsyncpa [#allocation3], 0  ;;  %s4788_s0 = inlined_call_operand.vmem [shape: f32[1024,8], index: 0, kind: input, shape index: {}]   ;;  %s4789_s1 = inlined_call_operand.vmem [shape: f32[8,128], index: 1, kind: input, shape index: {}]   ;;  %s4790_s2 = inlined_call_operand.vmem [shape: f32[1,128], index: 2, kind: input, shape index: {}]   ;;  %s4791_s3 = inlined_call_operand.vmem [shape: f32[128,128], index: 3, kind: input, shape index: {}]   ;;  %s4792_s4 = inlined_call_operand.vmem [shape: f32[1,128], index: 4, kind: input, shape index: {}]   ;;  %s4793_s5 = inlined_call_operand.vmem [shape: f32[128,128], index: 5, kind: input, shape index: {}]   ;;  %s4794_s6 = inlined_call_operand.vmem [shape: f32[1,128], index: 6, kind: input, shape index: {}]   ;;  %s4795_s7 = inlined_call_operand.vmem [shape: f32[128,128], index: 7, kind: input, shape index: {}]   ;;  %s4796_s8 = inlined_call_operand.vmem [shape: f32[1,128], index: 8, kind: input, shape index: {}]   ;;  %s4797_s9 = inlined_call_operand.hbm [shape: f32[1024,128], index: 9, kind: output, shape index: {}]  }
   0x1   :  { %16 = vsyncpa [#allocation3 + $0x1], 0  ;;  %s4062_s30 = smov 0   ;;  %s4064_s10 = smov 0  }
   0x2   :  { %s4066_s11 = smov 0   ;;  %s4068_s12 = smov 0  }
   0x3 LB: > { %s4083_s13 = sadd.s32 4294967295, %s4007_s12   ;;  %s2540_s14 = sadd.s32 4294967294, %s4007_s12   ;;  %s4007_s12 = sphi %s4068_s12, %s4803_s12   ;;  %s4003_s11 = sphi %s4066_s11, %s4802_s11   ;;  %s3999_s10 = sphi %s4064_s10, %s4801_s10   ;;  %s3995_s30 = sphi %s4062_s30, %s4800_s30  }
   0x4   : > { %s4087_s15 = sadd.s32 1, %s4007_s12   ;;  %s223_s16 = sadd.s32 1, %s4003_s11 }
   0x5   : > { %s220_s17 = ssub.s32 %s4007_s12, %s4087_s15  ;;  %p233_p0 = scmp.ne.s32.totalorder %s4003_s11, %s3999_s10 }
   0x6   : > { %p221_p1 = scmp.eq.s32.totalorder %s220_s17, 0  ;;  %p234_p2 = scmp.eq.s32.totalorder %s4083_s13, 1 }
   0x7   : > { %p239_p3 = scmp.ne.s32.totalorder %s3999_s10, %s3995_s30  ;;  %p240_p4 = scmp.eq.s32.totalorder %s2540_s14, 1 }
   0x8   : > { %s4098_s18 = scalar_select %p221_p1, %s4003_s11, %s223_s16  }
   0x9   : > { %p4100_p5 = por %p234_p2, %p233_p0  ;;  %p4104_p6 = por %p240_p4, %p239_p3 }
   0xa   : > { %p2543_p7 = scmp.ge.s32.totalorder %s4007_s12, 1  ;;  %p291_p8 = scmp.lt.s32.totalorder %s4007_s12, 3 }
   0xc   : > { %p292_p9 = pnand %p2543_p7, %p291_p8 }
   0xd   : > { %v398_v0 = vld [vmem:[%s4789_s1] sm:$0xff] (!%p292_p9)  ;;  %s2545_s23 = sshll.u32 (!%p292_p9), %s4083_s13, 6  ;;  %vm406_vm0 = vcmask (!%p292_p9), 64512   ;;  %v1049_v2 = vld [vmem:[%s4791_s3 + $0x8] sm:$0xff] (!%p292_p9)  ;;  %v1050_v3 = vld [vmem:[%s4791_s3 + $0x10] sm:$0xff] (!%p292_p9)  ;;  %s324_s25 = sand.u32 (!%p292_p9), 1, %s3999_s10  }
   0xe   : > { %295 = sbr.rel (%p292_p9) target bundleno = 1061 (0x425), region = 56  ;;  %2926 = vmatprep.subr.mxu0 (!%p292_p9), %v398_v0  ;;  %p328_p10 = scmp.lt.s32.totalorder (!%p292_p9), %s2545_s23, 127  ;;  %v1048_v1 = vld [vmem:[%s4791_s3] sm:$0xff] (!%p292_p9)  ;;  %v1051_v5 = vld [vmem:[%s4791_s3 + $0x18] sm:$0xff] (!%p292_p9)  ;;  %v1053_v7 = vld [vmem:[%s4791_s3 + $0x28] sm:$0xff] (!%p292_p9) }
   0xf   : > { %2927 = vmatpush3.msra.mxu0 (!%p292_p9), %v398_v0  ;;  %v3408_v4 = vpack.c.bf16 (!%p292_p9), %v1049_v2, %v1048_v1  ;;  %v1052_v6 = vld [vmem:[%s4791_s3 + $0x20] sm:$0xff] (!%p292_p9)  ;;  %v3412_v11 = vpack.c.bf16 (!%p292_p9), %v1051_v5, %v1050_v3  ;;  %v1054_v23 = vld [vmem:[%s4791_s3 + $0x30] sm:$0xff] (!%p292_p9)  ;;  %v1055_v24 = vld [vmem:[%s4791_s3 + $0x38] sm:$0xff] (!%p292_p9)  ;;  %s2544_s26 = sshll.u32 (!%p292_p9), %s324_s25, 9  ;;  %s2620_s29 = sshll.u32 (!%p292_p9), %s4083_s13, 13 }
  0x10   : > { %v3416_v13 = vpack.c.bf16 (!%p292_p9), %v1053_v7, %v1052_v6  ;;  %v3420_v25 = vpack.c.bf16 (!%p292_p9), %v1055_v24, %v1054_v23  ;;  %v1056_v56 = vld [vmem:[%s4791_s3 + $0x40] sm:$0xff] (!%p292_p9)  ;;  %v1057_v57 = vld [vmem:[%s4791_s3 + $0x48] sm:$0xff] (!%p292_p9)  ;;  %v1058_v61 = vld [vmem:[%s4791_s3 + $0x50] sm:$0xff] (!%p292_p9)  ;;  %s4738_s17 = scalar_lea.hbm (!%p292_p9), %s4797_s9, %s2620_s29  ;;  %s4747_s13 = scalar_lea.sflag (!%p292_p9), [#allocation3], %s324_s25 }
  0x11   : > { %3409 = vmatprep.subr.bf16.mxu1 (!%p292_p9), %v3408_v4  ;;  %v3424_v59 = vpack.c.bf16 (!%p292_p9), %v1057_v57, %v1056_v56  ;;  %v1059_v62 = vld [vmem:[%s4791_s3 + $0x58] sm:$0xff] (!%p292_p9)  ;;  %v1060_v2 = vld [vmem:[%s4791_s3 + $0x60] sm:$0xff] (!%p292_p9)  ;;  %v1061_v3 = vld [vmem:[%s4791_s3 + $0x68] sm:$0xff] (!%p292_p9) }
  0x12   : > { %3411 = vmatpush3.bf16.msra.mxu1 (!%p292_p9), %v3408_v4  ;;  %v3428_v0 = vpack.c.bf16 (!%p292_p9), %v1059_v62, %v1058_v61  ;;  %v3432_v5 = vpack.c.bf16 (!%p292_p9), %v1061_v3, %v1060_v2  ;;  %v1062_v7 = vld [vmem:[%s4791_s3 + $0x70] sm:$0xff] (!%p292_p9)  ;;  %v1529_v56 = vld [vmem:[%s4793_s5 + $0x48] sm:$0xff] (!%p292_p9) }
  0x13   : > { %3413 = vmatprep.subr.bf16.mxu1 (!%p292_p9), %v3412_v11 }
  0x15   : > { %s4805_s23 = smov (!%p328_p10, %s2545_s23), 127 }
  0x16   : > { %s2546_s24 = sshll.u32 %s4805_s23, 3  ;;  %3415 = vmatpush3.bf16.msra.mxu1 %v3412_v11  ;;  %s4009_s23 = smov [#allocation2]  }
  0x17   : > { %s4126_s21 = scalar_lea.vmem %s4788_s0, %s2546_s24  ;;  %3417 = vmatprep.subr.bf16.mxu1 %v3416_v13  ;;  %s4608_s24 = scalar_lea.vmem [#allocation2], %s2544_s26 }
  0x18   : > { %v334_v8 = vld [vmem:[%s4126_s21] sm:$0xff]  ;;  %v335_v9 = vld [vmem:[%s4126_s21 + $0x8] sm:$0xff]  ;;  %v336_v10 = vld [vmem:[%s4126_s21 + $0x10] sm:$0xff]  ;;  %s2478_s14 = sshll.u32 %s4608_s24, 4  ;;  %s3949_s26 = sshll.u32 %s4009_s23, 4  ;;  %s4740_s14 = int_to_ptr.vmem [resolvable:$true] %s2478_s14  ;;  %s3950_s26 = int_to_ptr.vmem [resolvable:$false] %s3949_s26 }
  0x19   : > { %2928 = vmatprep.mubr.msk.f32.mxu0 %vm406_vm0, %v334_v8  ;;  %v337_v12 = vld [vmem:[%s4126_s21 + $0x18] sm:$0xff]  ;;  %v338_v14 = vld [vmem:[%s4126_s21 + $0x20] sm:$0xff]  ;;  %v339_v15 = vld [vmem:[%s4126_s21 + $0x28] sm:$0xff]  ;;  %s3945_s22 = scalar_lea.vmem %s4740_s14, 8192  ;;  %s3951_s27 = scalar_lea.vmem %s3950_s26, 16384 }
  0x1a   : > { %2929 = vmatmul.mubr.msk.f32.vlgmr.msra.gmra.mrb[0].mxu0 %vm406_vm0, %v335_v9  ;;  %v340_v16 = vld [vmem:[%s4126_s21 + $0x30] sm:$0xff]  ;;  %3419 = vmatpush3.bf16.msra.mxu1 %v3416_v13  ;;  %v341_v17 = vld [vmem:[%s4126_s21 + $0x38] sm:$0xff]  ;;  %v342_v18 = vld [vmem:[%s4126_s21 + $0x40] sm:$0xff]  ;;  %p3946_p11 = scmp.ne.s32.totalorder %s4740_s14, %s3945_s22  ;;  %p3952_p0 = scmp.lt.s32.totalorder %s4740_s14, %s3950_s26 }
  0x1b   : > { %2931 = vmatprep.mubr.msk.f32.mxu0 %vm406_vm0, %v336_v10  ;;  %v343_v19 = vld [vmem:[%s4126_s21 + $0x48] sm:$0xff]  ;;  %v344_v20 = vld [vmem:[%s4126_s21 + $0x50] sm:$0xff]  ;;  %v345_v21 = vld [vmem:[%s4126_s21 + $0x58] sm:$0xff]  ;;  %3421 = vmatprep.subr.bf16.mxu1 %v3420_v25  ;;  %p3953_p1 = scmp.lt.s32.totalorder %s3951_s27, %s3945_s22 }
  0x1c   : > { %v346_v22 = vld [vmem:[%s4126_s21 + $0x60] sm:$0xff]  ;;  %v347_v26 = vld [vmem:[%s4126_s21 + $0x68] sm:$0xff]  ;;  %v348_v27 = vld [vmem:[%s4126_s21 + $0x70] sm:$0xff]  ;;  %p3947_p12 = pnand %p3946_p11, %p4100_p5 }
  0x1d   : > { %v349_v28 = vld [vmem:[%s4126_s21 + $0x78] sm:$0xff]  ;;  %v350_v29 = vld [vmem:[%s4126_s21 + $0x80] sm:$0xff]  ;;  %v351_v30 = vld [vmem:[%s4126_s21 + $0x88] sm:$0xff]  ;;  %p3954_p2 = por %p3953_p1, %p3952_p0 }
  0x1e   : > { %2932 = vmatmul.mubr.msk.f32.gmra.mrb[2].mxu0 %vm406_vm0, %v337_v12  ;;  %3423 = vmatpush3.bf16.msra.mxu1 %v3420_v25  ;;  %v352_v31 = vld [vmem:[%s4126_s21 + $0x90] sm:$0xff]  ;;  %v353_v32 = vld [vmem:[%s4126_s21 + $0x98] sm:$0xff]  ;;  %v354_v33 = vld [vmem:[%s4126_s21 + $0xa0] sm:$0xff]  ;;  %p3948_p13 = pneg %p3947_p12 }
  0x1f   : > { %2934 = vmatprep.mubr.msk.f32.mxu0 %vm406_vm0, %v338_v14  ;;  %v355_v34 = vld [vmem:[%s4126_s21 + $0xa8] sm:$0xff]  ;;  %v356_v35 = vld [vmem:[%s4126_s21 + $0xb0] sm:$0xff]  ;;  %v357_v36 = vld [vmem:[%s4126_s21 + $0xb8] sm:$0xff]  ;;  %3425 = vmatprep.subr.bf16.mxu1 %v3424_v59 }
  0x20   : > { %v358_v37 = vld [vmem:[%s4126_s21 + $0xc0] sm:$0xff]  ;;  %v359_v38 = vld [vmem:[%s4126_s21 + $0xc8] sm:$0xff]  ;;  %v360_v39 = vld [vmem:[%s4126_s21 + $0xd0] sm:$0xff]  ;;  %p3955_p3 = pnand %p3954_p2, %p3948_p13 }
  0x21   : > { %v361_v40 = vld [vmem:[%s4126_s21 + $0xd8] sm:$0xff]  ;;  %v362_v41 = vld [vmem:[%s4126_s21 + $0xe0] sm:$0xff]  ;;  %v363_v42 = vld [vmem:[%s4126_s21 + $0xe8] sm:$0xff] }
  0x22   : > { %2935 = vmatmul.mubr.msk.f32.gmra.mrb[4].mxu0 %vm406_vm0, %v339_v15  ;;  %v364_v43 = vld [vmem:[%s4126_s21 + $0xf0] sm:$0xff]  ;;  %v365_v44 = vld [vmem:[%s4126_s21 + $0xf8] sm:$0xff]  ;;  %v366_v45 = vld [vmem:[%s4126_s21 + $0x100] sm:$0xff]  ;;  %3427 = vmatpush3.bf16.msra.mxu1 %v3424_v59 }
  0x23   : > { %2937 = vmatprep.mubr.msk.f32.mxu0 %vm406_vm0, %v340_v16  ;;  %v367_v46 = vld [vmem:[%s4126_s21 + $0x108] sm:$0xff]  ;;  %v368_v47 = vld [vmem:[%s4126_s21 + $0x110] sm:$0xff]  ;;  %v369_v48 = vld [vmem:[%s4126_s21 + $0x118] sm:$0xff]  ;;  %3429 = vmatprep.subr.bf16.mxu1 %v3428_v0 }
  0x24   : > { %v370_v49 = vld [vmem:[%s4126_s21 + $0x120] sm:$0xff]  ;;  %v371_v50 = vld [vmem:[%s4126_s21 + $0x128] sm:$0xff]  ;;  %v372_v51 = vld [vmem:[%s4126_s21 + $0x130] sm:$0xff] }
  0x25   : > { %v373_v52 = vld [vmem:[%s4126_s21 + $0x138] sm:$0xff]  ;;  %v374_v53 = vld [vmem:[%s4126_s21 + $0x140] sm:$0xff]  ;;  %v375_v54 = vld [vmem:[%s4126_s21 + $0x148] sm:$0xff] }
  0x26   : > { %2938 = vmatmul.mubr.msk.f32.gmra.mrb[6].mxu0 %vm406_vm0, %v341_v17  ;;  %v376_v55 = vld [vmem:[%s4126_s21 + $0x150] sm:$0xff]  ;;  %v377_v58 = vld [vmem:[%s4126_s21 + $0x158] sm:$0xff]  ;;  %v378_v60 = vld [vmem:[%s4126_s21 + $0x160] sm:$0xff]  ;;  %3431 = vmatpush3.bf16.msra.mxu1 %v3428_v0 }
  0x27   : > { %2940 = vmatprep.mubr.msk.f32.mxu0 %vm406_vm0, %v342_v18  ;;  %v379_v63 = vld [vmem:[%s4126_s21 + $0x168] sm:$0xff]  ;;  %v380_v1 = vld [vmem:[%s4126_s21 + $0x170] sm:$0xff]  ;;  %v381_v4 = vld [vmem:[%s4126_s21 + $0x178] sm:$0xff]  ;;  %3433 = vmatprep.subr.bf16.mxu1 %v3432_v5 }
  0x28   : > { %v382_v6 = vld [vmem:[%s4126_s21 + $0x180] sm:$0xff]  ;;  %v1063_v8 = vld [vmem:[%s4791_s3 + $0x78] sm:$0xff]  ;;  %v383_v9 = vld [vmem:[%s4126_s21 + $0x188] sm:$0xff] }
  0x29   : > { %v3436_v10 = vpack.c.bf16 %v1063_v8, %v1062_v7  ;;  %v384_v11 = vld [vmem:[%s4126_s21 + $0x190] sm:$0xff]  ;;  %v385_v12 = vld [vmem:[%s4126_s21 + $0x198] sm:$0xff]  ;;  %v386_v13 = vld [vmem:[%s4126_s21 + $0x1a0] sm:$0xff] }
  0x2a   : > { %2941 = vmatmul.mubr.msk.f32.gmra.mrb[8].mxu0 %vm406_vm0, %v343_v19  ;;  %3435 = vmatpush3.bf16.msra.mxu1 %v3432_v5  ;;  %v387_v14 = vld [vmem:[%s4126_s21 + $0x1a8] sm:$0xff]  ;;  %v388_v15 = vld [vmem:[%s4126_s21 + $0x1b0] sm:$0xff]  ;;  %v389_v16 = vld [vmem:[%s4126_s21 + $0x1b8] sm:$0xff] }
  0x2b   : > { %2943 = vmatprep.mubr.msk.f32.mxu0 %vm406_vm0, %v344_v20  ;;  %3437 = vmatprep.subr.bf16.mxu1 %v3436_v10  ;;  %v390_v17 = vld [vmem:[%s4126_s21 + $0x1c0] sm:$0xff]  ;;  %v391_v18 = vld [vmem:[%s4126_s21 + $0x1c8] sm:$0xff]  ;;  %v392_v19 = vld [vmem:[%s4126_s21 + $0x1d0] sm:$0xff] }
  0x2c   : > { %v393_v20 = vld [vmem:[%s4126_s21 + $0x1d8] sm:$0xff]  ;;  %v396_v23 = vld [vmem:[%s4126_s21 + $0x1f0] sm:$0xff]  ;;  %v1520_v25 = vld [vmem:[%s4793_s5] sm:$0xff] }
  0x2d   : > { %v397_v24 = vld [vmem:[%s4126_s21 + $0x1f8] sm:$0xff]  ;;  %v1530_v0 = vld [vmem:[%s4793_s5 + $0x50] sm:$0xff] }
  0x2e   : > { %2944 = vmatmul.mubr.msk.f32.gmra.mrb[10].mxu0 %vm406_vm0, %v345_v21  ;;  %3439 = vmatpush3.bf16.msra.mxu1 %v3436_v10  ;;  %v394_v21 = vld [vmem:[%s4126_s21 + $0x1e0] sm:$0xff]  ;;  %v1533_v10 = vld [vmem:[%s4793_s5 + $0x68] sm:$0xff] }
  0x2f   : > { %2946 = vmatprep.mubr.msk.f32.mxu0 %vm406_vm0, %v346_v22  ;;  %v395_v22 = vld [vmem:[%s4126_s21 + $0x1e8] sm:$0xff] }
  0x32   : > { %2947 = vmatmul.mubr.msk.f32.gmra.mrb[12].mxu0 %vm406_vm0, %v347_v26  ;;  %v1521_v26 = vld [vmem:[%s4793_s5 + $0x8] sm:$0xff] }
  0x33   : > { %2949 = vmatprep.mubr.msk.f32.mxu0 %vm406_vm0, %v348_v27  ;;  %v3440_v27 = vpack.c.bf16 %v1521_v26, %v1520_v25 }
  0x35   : > { %3441 = vmatprep.subr.bf16.mxu0 %v3440_v27 }
  0x36   : > { %2950 = vmatmul.mubr.msk.f32.gmra.mrb[14].mxu0 %vm406_vm0, %v349_v28  ;;  %v4304_v28 = vld [vmem:[%s4790_s2] ss:$0 sm:$0xff] }
  0x37   : > { %2952 = vmatprep.mubr.msk.f32.mxu0 %vm406_vm0, %v350_v29  ;;  %3443 = vmatpush3.bf16.msra.mxu0 %v3440_v27 }
  0x3a   : > { %2953 = vmatmul.mubr.msk.f32.gmra.mrb[16].mxu0 %vm406_vm0, %v351_v30  ;;  %v1522_v30 = vld [vmem:[%s4793_s5 + $0x10] sm:$0xff] }
  0x3b   : > { %2955 = vmatprep.mubr.msk.f32.mxu0 %vm406_vm0, %v352_v31  ;;  %v1523_v31 = vld [vmem:[%s4793_s5 + $0x18] sm:$0xff] }
  0x3e   : > { %2956 = vmatmul.mubr.msk.f32.gmra.mrb[18].mxu0 %vm406_vm0, %v353_v32 }
  0x3f   : > { %2958 = vmatprep.mubr.msk.f32.mxu0 %vm406_vm0, %v354_v33 }
  0x42   : > { %2959 = vmatmul.mubr.msk.f32.gmra.mrb[20].mxu0 %vm406_vm0, %v355_v34  ;;  %v3444_v34 = vpack.c.bf16 %v1523_v31, %v1522_v30 }
  0x43   : > { %2961 = vmatprep.mubr.msk.f32.mxu0 %vm406_vm0, %v356_v35 }
  0x44   : > { %3445 = vmatprep.subr.bf16.mxu0 %v3444_v34 }
  0x45   : > { %3447 = vmatpush3.bf16.msra.mxu0 %v3444_v34 }
  0x46   : > { %2962 = vmatmul.mubr.msk.f32.gmra.mrb[22].mxu0 %vm406_vm0, %v357_v36 }
  0x47   : > { %2964 = vmatprep.mubr.msk.f32.mxu0 %vm406_vm0, %v358_v37 }
  0x4a   : > { %2965 = vmatmul.mubr.msk.f32.gmra.mrb[24].mxu0 %vm406_vm0, %v359_v38 }
  0x4b   : > { %2967 = vmatprep.mubr.msk.f32.mxu0 %vm406_vm0, %v360_v39 }
  0x4e   : > { %2968 = vmatmul.mubr.msk.f32.gmra.mrb[26].mxu0 %vm406_vm0, %v361_v40 }
  0x4f   : > { %2970 = vmatprep.mubr.msk.f32.mxu0 %vm406_vm0, %v362_v41 }
  0x52   : > { %2971 = vmatmul.mubr.msk.f32.gmra.mrb[28].mxu0 %vm406_vm0, %v363_v42 }
  0x53   : > { %2973 = vmatprep.mubr.msk.f32.mxu0 %vm406_vm0, %v364_v43 }
  0x56   : > { %2974 = vmatmul.mubr.msk.f32.gmra.mrb[30].mxu0 %vm406_vm0, %v365_v44 }
  0x57   : > { %2976 = vmatprep.mubr.msk.f32.mxu0 %vm406_vm0, %v366_v45  ;;  %v1524_v45 = vld [vmem:[%s4793_s5 + $0x20] sm:$0xff] }
  0x5a   : > { %2977 = vmatmul.mubr.msk.f32.gmra.mrb[32].mxu0 %vm406_vm0, %v367_v46  ;;  %v1525_v46 = vld [vmem:[%s4793_s5 + $0x28] sm:$0xff] }
  0x5b   : > { %2979 = vmatprep.mubr.msk.f32.mxu0 %vm406_vm0, %v368_v47  ;;  %v1526_v47 = vld [vmem:[%s4793_s5 + $0x30] sm:$0xff] }
  0x5e   : > { %2980 = vmatmul.mubr.msk.f32.gmra.mrb[34].mxu0 %vm406_vm0, %v369_v48 }
  0x5f   : > { %2982 = vmatprep.mubr.msk.f32.mxu0 %vm406_vm0, %v370_v49 }
  0x62   : > { %2983 = vmatmul.mubr.msk.f32.gmra.mrb[36].mxu0 %vm406_vm0, %v371_v50  ;;  %v3448_v50 = vpack.c.bf16 %v1525_v46, %v1524_v45 }
  0x63   : > { %2985 = vmatprep.mubr.msk.f32.mxu0 %vm406_vm0, %v372_v51  ;;  %v1527_v51 = vld [vmem:[%s4793_s5 + $0x38] sm:$0xff] }
  0x64   : > { %3449 = vmatprep.subr.bf16.mxu0 %v3448_v50 }
  0x65   : > { %3451 = vmatpush3.bf16.msra.mxu0 %v3448_v50 }
  0x66   : > { %2986 = vmatmul.mubr.msk.f32.gmra.mrb[38].mxu0 %vm406_vm0, %v373_v52 }
  0x67   : > { %2988 = vmatprep.mubr.msk.f32.mxu0 %vm406_vm0, %v374_v53 }
  0x6a   : > { %2989 = vmatmul.mubr.msk.f32.gmra.mrb[40].mxu0 %vm406_vm0, %v375_v54  ;;  %v3452_v54 = vpack.c.bf16 %v1527_v51, %v1526_v47 }
  0x6b   : > { %2991 = vmatprep.mubr.msk.f32.mxu0 %vm406_vm0, %v376_v55  ;;  %v1528_v55 = vld [vmem:[%s4793_s5 + $0x40] sm:$0xff] }
  0x6c   : > { %3453 = vmatprep.subr.bf16.mxu0 %v3452_v54  ;;  %v3456_v61 = vpack.c.bf16 %v1529_v56, %v1528_v55 }
  0x6d   : > { %3455 = vmatpush3.bf16.msra.mxu0 %v3452_v54 }
  0x6e   : > { %2992 = vmatmul.mubr.msk.f32.gmra.mrb[42].mxu0 %vm406_vm0, %v377_v58  ;;  %3457 = vmatprep.subr.bf16.mxu0 %v3456_v61 }
  0x6f   : > { %2994 = vmatprep.mubr.msk.f32.mxu0 %vm406_vm0, %v378_v60 }
  0x71   : > { %3459 = vmatpush3.bf16.msra.mxu0 %v3456_v61 }
  0x72   : > { %2995 = vmatmul.mubr.msk.f32.gmra.mrb[44].mxu0 %vm406_vm0, %v379_v63 }
  0x73   : > { %2997 = vmatprep.mubr.msk.f32.mxu0 %vm406_vm0, %v380_v1  ;;  %v1531_v1 = vld [vmem:[%s4793_s5 + $0x58] sm:$0xff] }
  0x76   : > { %2998 = vmatmul.mubr.msk.f32.gmra.mrb[46].mxu0 %vm406_vm0, %v381_v4 }
  0x77   : > { %3000 = vmatprep.mubr.msk.f32.mxu0 %vm406_vm0, %v382_v6  ;;  %v3460_v6 = vpack.c.bf16 %v1531_v1, %v1530_v0 }
  0x79   : > { %3461 = vmatprep.subr.bf16.mxu0 %v3460_v6 }
  0x7a   : > { %3001 = vmatmul.mubr.msk.f32.gmra.mrb[48].mxu0 %vm406_vm0, %v383_v9  ;;  %v1532_v9 = vld [vmem:[%s4793_s5 + $0x60] sm:$0xff] }
  0x7b   : > { %3003 = vmatprep.mubr.msk.f32.mxu0 %vm406_vm0, %v384_v11  ;;  %3463 = vmatpush3.bf16.msra.mxu0 %v3460_v6 }
  0x7e   : > { %3004 = vmatmul.mubr.msk.f32.gmra.mrb[50].mxu0 %vm406_vm0, %v385_v12 }
  0x7f   : > { %3006 = vmatprep.mubr.msk.f32.mxu0 %vm406_vm0, %v386_v13 }
  0x82   : > { %3007 = vmatmul.mubr.msk.f32.gmra.mrb[52].mxu0 %vm406_vm0, %v387_v14 }
  0x83   : > { %3009 = vmatprep.mubr.msk.f32.mxu0 %vm406_vm0, %v388_v15  ;;  %v3464_v15 = vpack.c.bf16 %v1533_v10, %v1532_v9 }
  0x85   : > { %3465 = vmatprep.subr.bf16.mxu0 %v3464_v15 }
  0x86   : > { %3010 = vmatmul.mubr.msk.f32.gmra.mrb[54].mxu0 %vm406_vm0, %v389_v16 }
  0x87   : > { %3012 = vmatprep.mubr.msk.f32.mxu0 %vm406_vm0, %v390_v17  ;;  %3467 = vmatpush3.bf16.msra.mxu0 %v3464_v15 }
  0x8a   : > { %3013 = vmatmul.mubr.msk.f32.gmra.mrb[56].mxu0 %vm406_vm0, %v391_v18  ;;  %v1534_v18 = vld [vmem:[%s4793_s5 + $0x70] sm:$0xff] }
  0x8b   : > { %3015 = vmatprep.mubr.msk.f32.mxu0 %vm406_vm0, %v392_v19  ;;  %v1535_v19 = vld [vmem:[%s4793_s5 + $0x78] sm:$0xff] }
  0x8e   : > { %3016 = vmatmul.mubr.msk.f32.gmra.mrb[58].mxu0 %vm406_vm0, %v393_v20 }
  0x8f   : > { %3018 = vmatprep.mubr.msk.f32.mxu0 %vm406_vm0, %v394_v21 }
  0x92   : > { %3019 = vmatmul.mubr.msk.f32.gmra.mrb[60].mxu0 %vm406_vm0, %v395_v22 }
  0x93   : > { %3021 = vmatprep.mubr.msk.f32.mxu0 %vm406_vm0, %v396_v23 }
  0x96   : > { %3022 = vmatmul.mubr.msk.f32.gmra.mrb[62].mxu0 %vm406_vm0, %v397_v24  ;;  %v3468_v24 = vpack.c.bf16 %v1535_v19, %v1534_v18 }
  0x98   : > { %3469 = vmatprep.subr.bf16.mxu0 %v3468_v24 }
  0x99   : > { %3471 = vmatpush3.bf16.msra.mxu0 %v3468_v24 }
  0xed   : > { %v2930_v29 = vpop.f32.mrb[0].mxu0 }
  0xee   : > { %v671_v32 = vadd.f32 %v2930_v29, %v4304_v28  ;;  %v665_v33 = vpop.f32.mrb[1].mxu0 }
  0xef   : > { %v666_v35 = vadd.f32 %v4304_v28, %v665_v33 }
  0xf1   : > { %3561 = vtanh.f32 %v666_v35  ;;  %v2933_v36 = vpop.f32.mrb[2].mxu0 }
  0xf2   : > { %3563 = vtanh.f32 %v671_v32  ;;  %v681_v37 = vadd.f32 %v2933_v36, %v4304_v28  ;;  %v675_v38 = vpop.f32.mrb[3].mxu0 }
  0xf3   : > { %v676_v39 = vadd.f32 %v4304_v28, %v675_v38 }
  0xf5   : > { %3565 = vtanh.f32 %v676_v39  ;;  %v2936_v40 = vpop.f32.mrb[4].mxu0 }
  0xf6   : > { %3567 = vtanh.f32 %v681_v37  ;;  %v691_v41 = vadd.f32 %v2936_v40, %v4304_v28  ;;  %v685_v42 = vpop.f32.mrb[5].mxu0 }
  0xf7   : > { %v686_v43 = vadd.f32 %v4304_v28, %v685_v42 }
  0xf9   : > { %3569 = vtanh.f32 %v686_v43  ;;  %v2939_v44 = vpop.f32.mrb[6].mxu0 }
  0xfa   : > { %3571 = vtanh.f32 %v691_v41  ;;  %v701_v48 = vadd.f32 %v2939_v44, %v4304_v28  ;;  %v695_v49 = vpop.f32.mrb[7].mxu0 }
  0xfb   : > { %v3562_v52 = vpop.eup %3561  ;;  %v696_v53 = vadd.f32 %v4304_v28, %v695_v49 }
  0xfc   : > { %v3564_v57 = vpop.eup %3563  ;;  %3056 = vmatprep.mubr.f32.mxu1 %v3562_v52 }
  0xfd   : > { %3573 = vtanh.f32 %v696_v53  ;;  %v2942_v58 = vpop.f32.mrb[8].mxu0  ;;  %3057 = vmatmul.mubr.f32.vlgmr.msra.gmra.mrb[0].mxu1 %v3564_v57 }
  0xfe   : > { %3575 = vtanh.f32 %v701_v48  ;;  %v711_v59 = vadd.f32 %v2942_v58, %v4304_v28  ;;  %v705_v60 = vpop.f32.mrb[9].mxu0 }
  0xff   : > { %v3566_v62 = vpop.eup %3565  ;;  %v706_v63 = vadd.f32 %v4304_v28, %v705_v60 }
 0x100   : > { %v3568_v2 = vpop.eup %3567  ;;  %3059 = vmatprep.mubr.f32.mxu1 %v3566_v62 }
 0x101   : > { %3577 = vtanh.f32 %v706_v63  ;;  %v2945_v3 = vpop.f32.mrb[10].mxu0  ;;  %3060 = vmatmul.mubr.f32.gmra.mrb[2].mxu1 %v3568_v2 }
 0x102   : > { %3579 = vtanh.f32 %v711_v59  ;;  %v721_v4 = vadd.f32 %v2945_v3, %v4304_v28  ;;  %v715_v5 = vpop.f32.mrb[11].mxu0 }
 0x103   : > { %v3570_v7 = vpop.eup %3569  ;;  %v716_v8 = vadd.f32 %v4304_v28, %v715_v5 }
 0x104   : > { %v3572_v11 = vpop.eup %3571  ;;  %3062 = vmatprep.mubr.f32.mxu1 %v3570_v7 }
 0x105   : > { %3581 = vtanh.f32 %v716_v8  ;;  %v2948_v12 = vpop.f32.mrb[12].mxu0  ;;  %3063 = vmatmul.mubr.f32.gmra.mrb[4].mxu1 %v3572_v11 }
 0x106   : > { %3583 = vtanh.f32 %v721_v4  ;;  %v731_v13 = vadd.f32 %v2948_v12, %v4304_v28  ;;  %v725_v14 = vpop.f32.mrb[13].mxu0 }
 0x107   : > { %v3574_v16 = vpop.eup %3573  ;;  %v726_v17 = vadd.f32 %v4304_v28, %v725_v14 }
 0x108   : > { %v3576_v20 = vpop.eup %3575  ;;  %3065 = vmatprep.mubr.f32.mxu1 %v3574_v16 }
 0x109   : > { %3585 = vtanh.f32 %v726_v17  ;;  %v2951_v21 = vpop.f32.mrb[14].mxu0  ;;  %3066 = vmatmul.mubr.f32.gmra.mrb[6].mxu1 %v3576_v20 }
 0x10a   : > { %3587 = vtanh.f32 %v731_v13  ;;  %v741_v22 = vadd.f32 %v2951_v21, %v4304_v28  ;;  %v735_v23 = vpop.f32.mrb[15].mxu0 }
 0x10b   : > { %v3578_v25 = vpop.eup %3577  ;;  %v736_v26 = vadd.f32 %v4304_v28, %v735_v23 }
 0x10c   : > { %v3580_v27 = vpop.eup %3579  ;;  %3068 = vmatprep.mubr.f32.mxu1 %v3578_v25 }
 0x10d   : > { %3589 = vtanh.f32 %v736_v26  ;;  %v2954_v29 = vpop.f32.mrb[16].mxu0  ;;  %3069 = vmatmul.mubr.f32.gmra.mrb[8].mxu1 %v3580_v27 }
 0x10e   : > { %3591 = vtanh.f32 %v741_v22  ;;  %v751_v30 = vadd.f32 %v2954_v29, %v4304_v28  ;;  %v745_v31 = vpop.f32.mrb[17].mxu0 }
 0x10f   : > { %v3582_v32 = vpop.eup %3581  ;;  %v746_v33 = vadd.f32 %v4304_v28, %v745_v31 }
 0x110   : > { %v3584_v34 = vpop.eup %3583  ;;  %3071 = vmatprep.mubr.f32.mxu1 %v3582_v32 }
 0x111   : > { %3593 = vtanh.f32 %v746_v33  ;;  %v2957_v35 = vpop.f32.mrb[18].mxu0  ;;  %3072 = vmatmul.mubr.f32.gmra.mrb[10].mxu1 %v3584_v34 }
 0x112   : > { %3595 = vtanh.f32 %v751_v30  ;;  %v761_v36 = vadd.f32 %v2957_v35, %v4304_v28  ;;  %v755_v37 = vpop.f32.mrb[19].mxu0 }
 0x113   : > { %v3586_v38 = vpop.eup %3585  ;;  %v756_v39 = vadd.f32 %v4304_v28, %v755_v37 }
 0x114   : > { %v3588_v40 = vpop.eup %3587  ;;  %3074 = vmatprep.mubr.f32.mxu1 %v3586_v38 }
 0x115   : > { %3597 = vtanh.f32 %v756_v39  ;;  %v2960_v41 = vpop.f32.mrb[20].mxu0  ;;  %3075 = vmatmul.mubr.f32.gmra.mrb[12].mxu1 %v3588_v40 }
 0x116   : > { %3599 = vtanh.f32 %v761_v36  ;;  %v771_v42 = vadd.f32 %v2960_v41, %v4304_v28  ;;  %v765_v43 = vpop.f32.mrb[21].mxu0 }
 0x117   : > { %v3590_v44 = vpop.eup %3589  ;;  %v766_v45 = vadd.f32 %v4304_v28, %v765_v43 }
 0x118   : > { %v3592_v46 = vpop.eup %3591  ;;  %3077 = vmatprep.mubr.f32.mxu1 %v3590_v44 }
 0x119   : > { %3601 = vtanh.f32 %v766_v45  ;;  %v2963_v47 = vpop.f32.mrb[22].mxu0  ;;  %3078 = vmatmul.mubr.f32.gmra.mrb[14].mxu1 %v3592_v46 }
 0x11a   : > { %3603 = vtanh.f32 %v771_v42  ;;  %v781_v48 = vadd.f32 %v2963_v47, %v4304_v28  ;;  %v775_v49 = vpop.f32.mrb[23].mxu0 }
 0x11b   : > { %v3594_v50 = vpop.eup %3593  ;;  %v776_v51 = vadd.f32 %v4304_v28, %v775_v49 }
 0x11c   : > { %v3596_v52 = vpop.eup %3595  ;;  %3080 = vmatprep.mubr.f32.mxu1 %v3594_v50 }
 0x11d   : > { %3605 = vtanh.f32 %v776_v51  ;;  %v2966_v53 = vpop.f32.mrb[24].mxu0  ;;  %3081 = vmatmul.mubr.f32.gmra.mrb[16].mxu1 %v3596_v52 }
 0x11e   : > { %3607 = vtanh.f32 %v781_v48  ;;  %v791_v54 = vadd.f32 %v2966_v53, %v4304_v28  ;;  %v785_v55 = vpop.f32.mrb[25].mxu0 }
 0x11f   : > { %v3598_v56 = vpop.eup %3597  ;;  %v786_v57 = vadd.f32 %v4304_v28, %v785_v55 }
 0x120   : > { %v3600_v58 = vpop.eup %3599  ;;  %3083 = vmatprep.mubr.f32.mxu1 %v3598_v56 }
 0x121   : > { %3609 = vtanh.f32 %v786_v57  ;;  %v2969_v59 = vpop.f32.mrb[26].mxu0  ;;  %3084 = vmatmul.mubr.f32.gmra.mrb[18].mxu1 %v3600_v58 }
 0x122   : > { %3611 = vtanh.f32 %v791_v54  ;;  %v801_v60 = vadd.f32 %v2969_v59, %v4304_v28  ;;  %v795_v61 = vpop.f32.mrb[27].mxu0 }
 0x123   : > { %v3602_v62 = vpop.eup %3601  ;;  %v796_v63 = vadd.f32 %v4304_v28, %v795_v61 }
 0x124   : > { %v3604_v0 = vpop.eup %3603  ;;  %3086 = vmatprep.mubr.f32.mxu1 %v3602_v62 }
 0x125   : > { %3613 = vtanh.f32 %v796_v63  ;;  %v2972_v1 = vpop.f32.mrb[28].mxu0  ;;  %3087 = vmatmul.mubr.f32.gmra.mrb[20].mxu1 %v3604_v0 }
 0x126   : > { %3615 = vtanh.f32 %v801_v60  ;;  %v811_v2 = vadd.f32 %v2972_v1, %v4304_v28  ;;  %v805_v3 = vpop.f32.mrb[29].mxu0 }
 0x127   : > { %v3606_v4 = vpop.eup %3605  ;;  %v806_v5 = vadd.f32 %v4304_v28, %v805_v3 }
 0x128   : > { %v3608_v6 = vpop.eup %3607  ;;  %3089 = vmatprep.mubr.f32.mxu1 %v3606_v4 }
 0x129   : > { %3617 = vtanh.f32 %v806_v5  ;;  %v2975_v7 = vpop.f32.mrb[30].mxu0  ;;  %3090 = vmatmul.mubr.f32.gmra.mrb[22].mxu1 %v3608_v6 }
 0x12a   : > { %3619 = vtanh.f32 %v811_v2  ;;  %v821_v8 = vadd.f32 %v2975_v7, %v4304_v28  ;;  %v815_v9 = vpop.f32.mrb[31].mxu0 }
 0x12b   : > { %v3610_v10 = vpop.eup %3609  ;;  %v816_v11 = vadd.f32 %v4304_v28, %v815_v9 }
 0x12c   : > { %v3612_v12 = vpop.eup %3611  ;;  %3092 = vmatprep.mubr.f32.mxu1 %v3610_v10 }
 0x12d   : > { %3621 = vtanh.f32 %v816_v11  ;;  %v2978_v13 = vpop.f32.mrb[32].mxu0  ;;  %3093 = vmatmul.mubr.f32.gmra.mrb[24].mxu1 %v3612_v12 }
 0x12e   : > { %3623 = vtanh.f32 %v821_v8  ;;  %v831_v14 = vadd.f32 %v2978_v13, %v4304_v28  ;;  %v825_v15 = vpop.f32.mrb[33].mxu0 }
 0x12f   : > { %v3614_v16 = vpop.eup %3613  ;;  %v826_v17 = vadd.f32 %v4304_v28, %v825_v15 }
 0x130   : > { %v3616_v18 = vpop.eup %3615  ;;  %3095 = vmatprep.mubr.f32.mxu1 %v3614_v16 }
 0x131   : > { %3625 = vtanh.f32 %v826_v17  ;;  %v2981_v19 = vpop.f32.mrb[34].mxu0  ;;  %3096 = vmatmul.mubr.f32.gmra.mrb[26].mxu1 %v3616_v18 }
 0x132   : > { %3627 = vtanh.f32 %v831_v14  ;;  %v841_v20 = vadd.f32 %v2981_v19, %v4304_v28  ;;  %v835_v21 = vpop.f32.mrb[35].mxu0 }
 0x133   : > { %v3618_v22 = vpop.eup %3617  ;;  %v836_v23 = vadd.f32 %v4304_v28, %v835_v21 }
 0x134   : > { %v3620_v24 = vpop.eup %3619  ;;  %3098 = vmatprep.mubr.f32.mxu1 %v3618_v22 }
 0x135   : > { %3629 = vtanh.f32 %v836_v23  ;;  %v2984_v25 = vpop.f32.mrb[36].mxu0  ;;  %3099 = vmatmul.mubr.f32.gmra.mrb[28].mxu1 %v3620_v24 }
 0x136   : > { %3631 = vtanh.f32 %v841_v20  ;;  %v851_v26 = vadd.f32 %v2984_v25, %v4304_v28  ;;  %v845_v27 = vpop.f32.mrb[37].mxu0 }
 0x137   : > { %v3622_v29 = vpop.eup %3621  ;;  %v846_v30 = vadd.f32 %v4304_v28, %v845_v27 }
 0x138   : > { %v3624_v31 = vpop.eup %3623  ;;  %3101 = vmatprep.mubr.f32.mxu1 %v3622_v29 }
 0x139   : > { %3633 = vtanh.f32 %v846_v30  ;;  %v2987_v32 = vpop.f32.mrb[38].mxu0  ;;  %3102 = vmatmul.mubr.f32.gmra.mrb[30].mxu1 %v3624_v31 }
 0x13a   : > { %3635 = vtanh.f32 %v851_v26  ;;  %v861_v33 = vadd.f32 %v2987_v32, %v4304_v28  ;;  %v855_v34 = vpop.f32.mrb[39].mxu0 }
 0x13b   : > { %v3626_v35 = vpop.eup %3625  ;;  %v856_v36 = vadd.f32 %v4304_v28, %v855_v34 }
 0x13c   : > { %v3628_v37 = vpop.eup %3627  ;;  %3104 = vmatprep.mubr.f32.mxu1 %v3626_v35 }
 0x13d   : > { %3637 = vtanh.f32 %v856_v36  ;;  %v2990_v38 = vpop.f32.mrb[40].mxu0  ;;  %3105 = vmatmul.mubr.f32.gmra.mrb[32].mxu1 %v3628_v37 }
 0x13e   : > { %3639 = vtanh.f32 %v861_v33  ;;  %v871_v39 = vadd.f32 %v2990_v38, %v4304_v28  ;;  %v865_v40 = vpop.f32.mrb[41].mxu0 }
 0x13f   : > { %v3630_v41 = vpop.eup %3629  ;;  %v866_v42 = vadd.f32 %v4304_v28, %v865_v40 }
 0x140   : > { %v3632_v43 = vpop.eup %3631  ;;  %3107 = vmatprep.mubr.f32.mxu1 %v3630_v41 }
 0x141   : > { %3641 = vtanh.f32 %v866_v42  ;;  %v2993_v44 = vpop.f32.mrb[42].mxu0  ;;  %3108 = vmatmul.mubr.f32.gmra.mrb[34].mxu1 %v3632_v43 }
 0x142   : > { %3643 = vtanh.f32 %v871_v39  ;;  %v881_v45 = vadd.f32 %v2993_v44, %v4304_v28  ;;  %v875_v46 = vpop.f32.mrb[43].mxu0 }
 0x143   : > { %v3634_v47 = vpop.eup %3633  ;;  %v876_v48 = vadd.f32 %v4304_v28, %v875_v46 }
 0x144   : > { %v3636_v49 = vpop.eup %3635  ;;  %3110 = vmatprep.mubr.f32.mxu1 %v3634_v47 }
 0x145   : > { %3645 = vtanh.f32 %v876_v48  ;;  %v2996_v50 = vpop.f32.mrb[44].mxu0  ;;  %3111 = vmatmul.mubr.f32.gmra.mrb[36].mxu1 %v3636_v49 }
 0x146   : > { %3647 = vtanh.f32 %v881_v45  ;;  %v891_v51 = vadd.f32 %v2996_v50, %v4304_v28  ;;  %v885_v52 = vpop.f32.mrb[45].mxu0 }
 0x147   : > { %v3638_v53 = vpop.eup %3637  ;;  %v886_v54 = vadd.f32 %v4304_v28, %v885_v52 }
 0x148   : > { %v3640_v55 = vpop.eup %3639  ;;  %3113 = vmatprep.mubr.f32.mxu1 %v3638_v53 }
 0x149   : > { %3649 = vtanh.f32 %v886_v54  ;;  %v2999_v56 = vpop.f32.mrb[46].mxu0  ;;  %3114 = vmatmul.mubr.f32.gmra.mrb[38].mxu1 %v3640_v55  ;;  %v1992_v54 = vld [vmem:[%s4795_s7] sm:$0xff]  ;;  %v1993_v55 = vld [vmem:[%s4795_s7 + $0x8] sm:$0xff] }
 0x14a   : > { %3651 = vtanh.f32 %v891_v51  ;;  %v901_v57 = vadd.f32 %v2999_v56, %v4304_v28  ;;  %v895_v58 = vpop.f32.mrb[47].mxu0 }
 0x14b   : > { %v3642_v59 = vpop.eup %3641  ;;  %v896_v60 = vadd.f32 %v4304_v28, %v895_v58  ;;  %v3472_v58 = vpack.c.bf16 %v1993_v55, %v1992_v54 }
 0x14c   : > { %v3644_v61 = vpop.eup %3643  ;;  %3116 = vmatprep.mubr.f32.mxu1 %v3642_v59 }
 0x14d   : > { %3653 = vtanh.f32 %v896_v60  ;;  %v3002_v62 = vpop.f32.mrb[48].mxu0  ;;  %3117 = vmatmul.mubr.f32.gmra.mrb[40].mxu1 %v3644_v61  ;;  %3504 = vmatprep.subr.bf16.mxu1 %v3472_v58 }
 0x14e   : > { %3655 = vtanh.f32 %v901_v57  ;;  %v911_v63 = vadd.f32 %v3002_v62, %v4304_v28  ;;  %v905_v0 = vpop.f32.mrb[49].mxu0  ;;  %3473 = vmatprep.subr.bf16.mxu0 %v3472_v58  ;;  %3512 = vmatpush3.bf16.msra.mxu1 %v3472_v58 }
 0x14f   : > { %v3646_v1 = vpop.eup %3645  ;;  %v906_v2 = vadd.f32 %v4304_v28, %v905_v0 }
 0x150   : > { %v3648_v3 = vpop.eup %3647  ;;  %3119 = vmatprep.mubr.f32.mxu1 %v3646_v1 }
 0x151   : > { %3657 = vtanh.f32 %v906_v2  ;;  %v3005_v4 = vpop.f32.mrb[50].mxu0  ;;  %3120 = vmatmul.mubr.f32.gmra.mrb[42].mxu1 %v3648_v3 }
 0x152   : > { %3659 = vtanh.f32 %v911_v63  ;;  %v921_v5 = vadd.f32 %v3005_v4, %v4304_v28  ;;  %v915_v6 = vpop.f32.mrb[51].mxu0 }
 0x153   : > { %v3650_v7 = vpop.eup %3649  ;;  %v916_v8 = vadd.f32 %v4304_v28, %v915_v6  ;;  %v1995_v6 = vld [vmem:[%s4795_s7 + $0x18] sm:$0xff] }
 0x154   : > { %v3652_v9 = vpop.eup %3651  ;;  %3122 = vmatprep.mubr.f32.mxu1 %v3650_v7  ;;  %v1996_v7 = vld [vmem:[%s4795_s7 + $0x20] sm:$0xff] }
 0x155   : > { %3661 = vtanh.f32 %v916_v8  ;;  %v3008_v10 = vpop.f32.mrb[52].mxu0  ;;  %3123 = vmatmul.mubr.f32.gmra.mrb[44].mxu1 %v3652_v9 }
 0x156   : > { %3663 = vtanh.f32 %v921_v5  ;;  %v931_v11 = vadd.f32 %v3008_v10, %v4304_v28  ;;  %v925_v12 = vpop.f32.mrb[53].mxu0  ;;  %v1994_v5 = vld [vmem:[%s4795_s7 + $0x10] sm:$0xff] }
 0x157   : > { %v3654_v13 = vpop.eup %3653  ;;  %v926_v14 = vadd.f32 %v4304_v28, %v925_v12  ;;  %v3476_v10 = vpack.c.bf16 %v1995_v6, %v1994_v5 }
 0x158   : > { %v3656_v15 = vpop.eup %3655  ;;  %3125 = vmatprep.mubr.f32.mxu1 %v3654_v13 }
 0x159   : > { %3665 = vtanh.f32 %v926_v14  ;;  %v3011_v16 = vpop.f32.mrb[54].mxu0  ;;  %3126 = vmatmul.mubr.f32.gmra.mrb[46].mxu1 %v3656_v15  ;;  %3505 = vmatprep.subr.bf16.mxu1 %v3476_v10 }
 0x15a   : > { %3667 = vtanh.f32 %v931_v11  ;;  %v941_v17 = vadd.f32 %v3011_v16, %v4304_v28  ;;  %v935_v18 = vpop.f32.mrb[55].mxu0  ;;  %v1997_v11 = vld [vmem:[%s4795_s7 + $0x28] sm:$0xff]  ;;  %3513 = vmatpush3.bf16.msra.mxu1 %v3476_v10 }
 0x15b   : > { %v3658_v19 = vpop.eup %3657  ;;  %v936_v20 = vadd.f32 %v4304_v28, %v935_v18  ;;  %v3480_v15 = vpack.c.bf16 %v1997_v11, %v1996_v7  ;;  %v1999_v18 = vld [vmem:[%s4795_s7 + $0x38] sm:$0xff] }
 0x15c   : > { %v3660_v21 = vpop.eup %3659  ;;  %3128 = vmatprep.mubr.f32.mxu1 %v3658_v19 }
 0x15d   : > { %3669 = vtanh.f32 %v936_v20  ;;  %v3014_v22 = vpop.f32.mrb[56].mxu0  ;;  %3129 = vmatmul.mubr.f32.gmra.mrb[48].mxu1 %v3660_v21  ;;  %3506 = vmatprep.subr.bf16.mxu1 %v3480_v15 }
 0x15e   : > { %3671 = vtanh.f32 %v941_v17  ;;  %v951_v23 = vadd.f32 %v3014_v22, %v4304_v28  ;;  %v945_v24 = vpop.f32.mrb[57].mxu0  ;;  %v1998_v17 = vld [vmem:[%s4795_s7 + $0x30] sm:$0xff]  ;;  %3514 = vmatpush3.bf16.msra.mxu1 %v3480_v15 }
 0x15f   : > { %v3662_v25 = vpop.eup %3661  ;;  %v946_v26 = vadd.f32 %v4304_v28, %v945_v24  ;;  %v3484_v24 = vpack.c.bf16 %v1999_v18, %v1998_v17 }
 0x160   : > { %v3664_v27 = vpop.eup %3663  ;;  %3131 = vmatprep.mubr.f32.mxu1 %v3662_v25 }
 0x161   : > { %3673 = vtanh.f32 %v946_v26  ;;  %v3017_v29 = vpop.f32.mrb[58].mxu0  ;;  %3132 = vmatmul.mubr.f32.gmra.mrb[50].mxu1 %v3664_v27  ;;  %v2000_v26 = vld [vmem:[%s4795_s7 + $0x40] sm:$0xff]  ;;  %v2001_v27 = vld [vmem:[%s4795_s7 + $0x48] sm:$0xff]  ;;  %3507 = vmatprep.subr.bf16.mxu1 %v3484_v24 }
 0x162   : > { %3675 = vtanh.f32 %v951_v23  ;;  %v961_v30 = vadd.f32 %v3017_v29, %v4304_v28  ;;  %v955_v31 = vpop.f32.mrb[59].mxu0  ;;  %3515 = vmatpush3.bf16.msra.mxu1 %v3484_v24 }
 0x163   : > { %v3666_v32 = vpop.eup %3665  ;;  %v956_v33 = vadd.f32 %v4304_v28, %v955_v31 }
 0x164   : > { %v3668_v34 = vpop.eup %3667  ;;  %3134 = vmatprep.mubr.f32.mxu1 %v3666_v32 }
 0x165   : > { %3677 = vtanh.f32 %v956_v33  ;;  %v3020_v35 = vpop.f32.mrb[60].mxu0  ;;  %3135 = vmatmul.mubr.f32.gmra.mrb[52].mxu1 %v3668_v34  ;;  %v3488_v34 = vpack.c.bf16 %v2001_v27, %v2000_v26 }
 0x166   : > { %3679 = vtanh.f32 %v961_v30  ;;  %v971_v36 = vadd.f32 %v3020_v35, %v4304_v28  ;;  %v965_v37 = vpop.f32.mrb[61].mxu0 }
 0x167   : > { %v3670_v38 = vpop.eup %3669  ;;  %v966_v39 = vadd.f32 %v4304_v28, %v965_v37  ;;  %v2003_v37 = vld [vmem:[%s4795_s7 + $0x58] sm:$0xff]  ;;  %3508 = vmatprep.subr.bf16.mxu1 %v3488_v34 }
 0x168   : > { %v3672_v40 = vpop.eup %3671  ;;  %3137 = vmatprep.mubr.f32.mxu1 %v3670_v38  ;;  %3516 = vmatpush3.bf16.msra.mxu1 %v3488_v34 }
 0x169   : > { %3681 = vtanh.f32 %v966_v39  ;;  %v3023_v41 = vpop.f32.mrb[62].mxu0  ;;  %3138 = vmatmul.mubr.f32.gmra.mrb[54].mxu1 %v3672_v40 }
 0x16a   : > { %3683 = vtanh.f32 %v971_v36  ;;  %v981_v42 = vadd.f32 %v3023_v41, %v4304_v28  ;;  %v975_v43 = vpop.f32.mrb[63].mxu0  ;;  %v2002_v36 = vld [vmem:[%s4795_s7 + $0x50] sm:$0xff] }
 0x16b   : > { %v3674_v44 = vpop.eup %3673  ;;  %v976_v45 = vadd.f32 %v4304_v28, %v975_v43  ;;  %v4415_v28 = vld [vmem:[%s4792_s4] ss:$0 sm:$0xff]  ;;  %v3492_v43 = vpack.c.bf16 %v2003_v37, %v2002_v36 }
 0x16c   : > { %v3676_v46 = vpop.eup %3675  ;;  %3140 = vmatprep.mubr.f32.mxu1 %v3674_v44 }
 0x16d   : > { %3685 = vtanh.f32 %v976_v45  ;;  %3141 = vmatmul.mubr.f32.gmra.mrb[56].mxu1 %v3676_v46  ;;  %v2004_v45 = vld [vmem:[%s4795_s7 + $0x60] sm:$0xff]  ;;  %v2005_v46 = vld [vmem:[%s4795_s7 + $0x68] sm:$0xff]  ;;  %3509 = vmatprep.subr.bf16.mxu1 %v3492_v43 }
 0x16e   : > { %3687 = vtanh.f32 %v981_v42  ;;  %3517 = vmatpush3.bf16.msra.mxu1 %v3492_v43 }
 0x16f   : > { %v3678_v47 = vpop.eup %3677 }
 0x170   : > { %v3680_v48 = vpop.eup %3679  ;;  %3143 = vmatprep.mubr.f32.mxu1 %v3678_v47 }
 0x171   : > { %3144 = vmatmul.mubr.f32.gmra.mrb[58].mxu1 %v3680_v48 }
 0x173   : > { %v3682_v49 = vpop.eup %3681 }
 0x174   : > { %v3684_v50 = vpop.eup %3683  ;;  %3146 = vmatprep.mubr.f32.mxu1 %v3682_v49 }
 0x175   : > { %3147 = vmatmul.mubr.f32.gmra.mrb[60].mxu1 %v3684_v50 }
 0x177   : > { %v3686_v51 = vpop.eup %3685 }
 0x178   : > { %v3688_v52 = vpop.eup %3687  ;;  %3149 = vmatprep.mubr.f32.mxu1 %v3686_v51 }
 0x179   : > { %3150 = vmatmul.mubr.f32.gmra.mrb[62].mxu1 %v3688_v52  ;;  %v3496_v52 = vpack.c.bf16 %v2005_v46, %v2004_v45 }
 0x17b   : > { %3510 = vmatprep.subr.bf16.mxu1 %v3496_v52 }
 0x17c   : > { %3518 = vmatpush3.bf16.msra.mxu1 %v3496_v52 }
 0x1d0   : > { %v3058_v53 = vpop.f32.mrb[0].mxu1 }
 0x1d1   : > { %v1143_v56 = vadd.f32 %v3058_v53, %v4415_v28  ;;  %v1137_v57 = vpop.f32.mrb[1].mxu1 }
 0x1d2   : > { %v1138_v59 = vadd.f32 %v4415_v28, %v1137_v57 }
 0x1d4   : > { %3689 = vtanh.f32 %v1138_v59  ;;  %v3061_v60 = vpop.f32.mrb[2].mxu1 }
 0x1d5   : > { %3691 = vtanh.f32 %v1143_v56  ;;  %v1153_v61 = vadd.f32 %v3061_v60, %v4415_v28  ;;  %v1147_v62 = vpop.f32.mrb[3].mxu1 }
 0x1d6   : > { %v1148_v63 = vadd.f32 %v4415_v28, %v1147_v62 }
 0x1d8   : > { %3693 = vtanh.f32 %v1148_v63  ;;  %v3064_v0 = vpop.f32.mrb[4].mxu1 }
 0x1d9   : > { %3695 = vtanh.f32 %v1153_v61  ;;  %v1163_v1 = vadd.f32 %v3064_v0, %v4415_v28  ;;  %v1157_v2 = vpop.f32.mrb[5].mxu1 }
 0x1da   : > { %v1158_v3 = vadd.f32 %v4415_v28, %v1157_v2 }
 0x1dc   : > { %3697 = vtanh.f32 %v1158_v3  ;;  %v3067_v4 = vpop.f32.mrb[6].mxu1 }
 0x1dd   : > { %3699 = vtanh.f32 %v1163_v1  ;;  %v1173_v8 = vadd.f32 %v3067_v4, %v4415_v28  ;;  %v1167_v9 = vpop.f32.mrb[7].mxu1 }
 0x1de   : > { %v3690_v12 = vpop.eup %3689  ;;  %v1168_v13 = vadd.f32 %v4415_v28, %v1167_v9 }
 0x1df   : > { %v3692_v14 = vpop.eup %3691  ;;  %3184 = vmatprep.mubr.f32.mxu0 %v3690_v12 }
 0x1e0   : > { %3701 = vtanh.f32 %v1168_v13  ;;  %v3070_v16 = vpop.f32.mrb[8].mxu1  ;;  %3185 = vmatmul.mubr.f32.vlgmr.msra.gmra.mrb[64].mxu0 %v3692_v14 }
 0x1e1   : > { %3703 = vtanh.f32 %v1173_v8  ;;  %v1183_v19 = vadd.f32 %v3070_v16, %v4415_v28  ;;  %v1177_v20 = vpop.f32.mrb[9].mxu1  ;;  %3475 = vmatpush3.bf16.msra.mxu0 %v3472_v58 }
 0x1e2   : > { %v3694_v21 = vpop.eup %3693  ;;  %v1178_v22 = vadd.f32 %v4415_v28, %v1177_v20  ;;  %3477 = vmatprep.subr.bf16.mxu0 %v3476_v10 }
 0x1e3   : > { %v3696_v23 = vpop.eup %3695  ;;  %3187 = vmatprep.mubr.f32.mxu0 %v3694_v21 }
 0x1e4   : > { %3705 = vtanh.f32 %v1178_v22  ;;  %v3073_v25 = vpop.f32.mrb[10].mxu1  ;;  %3188 = vmatmul.mubr.f32.gmra.mrb[66].mxu0 %v3696_v23 }
 0x1e5   : > { %3707 = vtanh.f32 %v1183_v19  ;;  %v1193_v29 = vadd.f32 %v3073_v25, %v4415_v28  ;;  %v1187_v30 = vpop.f32.mrb[11].mxu1  ;;  %3479 = vmatpush3.bf16.msra.mxu0 %v3476_v10 }
 0x1e6   : > { %v3698_v31 = vpop.eup %3697  ;;  %v1188_v32 = vadd.f32 %v4415_v28, %v1187_v30  ;;  %3481 = vmatprep.subr.bf16.mxu0 %v3480_v15 }
 0x1e7   : > { %v3700_v33 = vpop.eup %3699  ;;  %3190 = vmatprep.mubr.f32.mxu0 %v3698_v31 }
 0x1e8   : > { %3709 = vtanh.f32 %v1188_v32  ;;  %v3076_v35 = vpop.f32.mrb[12].mxu1  ;;  %3191 = vmatmul.mubr.f32.gmra.mrb[68].mxu0 %v3700_v33 }
 0x1e9   : > { %3711 = vtanh.f32 %v1193_v29  ;;  %v1203_v38 = vadd.f32 %v3076_v35, %v4415_v28  ;;  %v1197_v39 = vpop.f32.mrb[13].mxu1  ;;  %3483 = vmatpush3.bf16.msra.mxu0 %v3480_v15 }
 0x1ea   : > { %v3702_v40 = vpop.eup %3701  ;;  %v1198_v41 = vadd.f32 %v4415_v28, %v1197_v39  ;;  %3485 = vmatprep.subr.bf16.mxu0 %v3484_v24 }
 0x1eb   : > { %v3704_v42 = vpop.eup %3703  ;;  %3193 = vmatprep.mubr.f32.mxu0 %v3702_v40 }
 0x1ec   : > { %3713 = vtanh.f32 %v1198_v41  ;;  %v3079_v44 = vpop.f32.mrb[14].mxu1  ;;  %3194 = vmatmul.mubr.f32.gmra.mrb[70].mxu0 %v3704_v42 }
 0x1ed   : > { %3715 = vtanh.f32 %v1203_v38  ;;  %v1213_v47 = vadd.f32 %v3079_v44, %v4415_v28  ;;  %v1207_v48 = vpop.f32.mrb[15].mxu1  ;;  %3487 = vmatpush3.bf16.msra.mxu0 %v3484_v24 }
 0x1ee   : > { %v3706_v49 = vpop.eup %3705  ;;  %v1208_v50 = vadd.f32 %v4415_v28, %v1207_v48  ;;  %3489 = vmatprep.subr.bf16.mxu0 %v3488_v34 }
 0x1ef   : > { %v3708_v51 = vpop.eup %3707  ;;  %3196 = vmatprep.mubr.f32.mxu0 %v3706_v49 }
 0x1f0   : > { %3717 = vtanh.f32 %v1208_v50  ;;  %v3082_v53 = vpop.f32.mrb[16].mxu1  ;;  %3197 = vmatmul.mubr.f32.gmra.mrb[72].mxu0 %v3708_v51 }
 0x1f1   : > { %3719 = vtanh.f32 %v1213_v47  ;;  %v1223_v54 = vadd.f32 %v3082_v53, %v4415_v28  ;;  %v1217_v55 = vpop.f32.mrb[17].mxu1  ;;  %3491 = vmatpush3.bf16.msra.mxu0 %v3488_v34 }
 0x1f2   : > { %v3710_v56 = vpop.eup %3709  ;;  %v1218_v57 = vadd.f32 %v4415_v28, %v1217_v55  ;;  %3493 = vmatprep.subr.bf16.mxu0 %v3492_v43 }
 0x1f3   : > { %v3712_v58 = vpop.eup %3711  ;;  %3199 = vmatprep.mubr.f32.mxu0 %v3710_v56 }
 0x1f4   : > { %3721 = vtanh.f32 %v1218_v57  ;;  %v3085_v59 = vpop.f32.mrb[18].mxu1  ;;  %3200 = vmatmul.mubr.f32.gmra.mrb[74].mxu0 %v3712_v58 }
 0x1f5   : > { %3723 = vtanh.f32 %v1223_v54  ;;  %v1233_v60 = vadd.f32 %v3085_v59, %v4415_v28  ;;  %v1227_v61 = vpop.f32.mrb[19].mxu1  ;;  %3495 = vmatpush3.bf16.msra.mxu0 %v3492_v43 }
 0x1f6   : > { %v3714_v62 = vpop.eup %3713  ;;  %v1228_v63 = vadd.f32 %v4415_v28, %v1227_v61  ;;  %3497 = vmatprep.subr.bf16.mxu0 %v3496_v52 }
 0x1f7   : > { %v3716_v0 = vpop.eup %3715  ;;  %3202 = vmatprep.mubr.f32.mxu0 %v3714_v62 }
 0x1f8   : > { %3725 = vtanh.f32 %v1228_v63  ;;  %v3088_v1 = vpop.f32.mrb[20].mxu1  ;;  %3203 = vmatmul.mubr.f32.gmra.mrb[76].mxu0 %v3716_v0 }
 0x1f9   : > { %3727 = vtanh.f32 %v1233_v60  ;;  %v1243_v2 = vadd.f32 %v3088_v1, %v4415_v28  ;;  %v1237_v3 = vpop.f32.mrb[21].mxu1  ;;  %3499 = vmatpush3.bf16.msra.mxu0 %v3496_v52 }
 0x1fa   : > { %v3718_v4 = vpop.eup %3717  ;;  %v1238_v5 = vadd.f32 %v4415_v28, %v1237_v3 }
 0x1fb   : > { %v3720_v6 = vpop.eup %3719  ;;  %3205 = vmatprep.mubr.f32.mxu0 %v3718_v4 }
 0x1fc   : > { %3729 = vtanh.f32 %v1238_v5  ;;  %v3091_v7 = vpop.f32.mrb[22].mxu1  ;;  %3206 = vmatmul.mubr.f32.gmra.mrb[78].mxu0 %v3720_v6 }
 0x1fd   : > { %3731 = vtanh.f32 %v1243_v2  ;;  %v1253_v8 = vadd.f32 %v3091_v7, %v4415_v28  ;;  %v1247_v9 = vpop.f32.mrb[23].mxu1 }
 0x1fe   : > { %v3722_v10 = vpop.eup %3721  ;;  %v1248_v11 = vadd.f32 %v4415_v28, %v1247_v9 }
 0x1ff   : > { %v3724_v12 = vpop.eup %3723  ;;  %3208 = vmatprep.mubr.f32.mxu0 %v3722_v10 }
 0x200   : > { %3733 = vtanh.f32 %v1248_v11  ;;  %v3094_v13 = vpop.f32.mrb[24].mxu1  ;;  %3209 = vmatmul.mubr.f32.gmra.mrb[80].mxu0 %v3724_v12 }
 0x201   : > { %3735 = vtanh.f32 %v1253_v8  ;;  %v1263_v14 = vadd.f32 %v3094_v13, %v4415_v28  ;;  %v1257_v15 = vpop.f32.mrb[25].mxu1 }
 0x202   : > { %v3726_v16 = vpop.eup %3725  ;;  %v1258_v17 = vadd.f32 %v4415_v28, %v1257_v15 }
 0x203   : > { %v3728_v18 = vpop.eup %3727  ;;  %3211 = vmatprep.mubr.f32.mxu0 %v3726_v16 }
 0x204   : > { %3737 = vtanh.f32 %v1258_v17  ;;  %v3097_v19 = vpop.f32.mrb[26].mxu1  ;;  %3212 = vmatmul.mubr.f32.gmra.mrb[82].mxu0 %v3728_v18 }
 0x205   : > { %3739 = vtanh.f32 %v1263_v14  ;;  %v1273_v20 = vadd.f32 %v3097_v19, %v4415_v28  ;;  %v1267_v21 = vpop.f32.mrb[27].mxu1 }
 0x206   : > { %v3730_v22 = vpop.eup %3729  ;;  %v1268_v23 = vadd.f32 %v4415_v28, %v1267_v21 }
 0x207   : > { %v3732_v24 = vpop.eup %3731  ;;  %3214 = vmatprep.mubr.f32.mxu0 %v3730_v22 }
 0x208   : > { %3741 = vtanh.f32 %v1268_v23  ;;  %v3100_v25 = vpop.f32.mrb[28].mxu1  ;;  %3215 = vmatmul.mubr.f32.gmra.mrb[84].mxu0 %v3732_v24 }
 0x209   : > { %3743 = vtanh.f32 %v1273_v20  ;;  %v1283_v26 = vadd.f32 %v3100_v25, %v4415_v28  ;;  %v1277_v27 = vpop.f32.mrb[29].mxu1 }
 0x20a   : > { %v3734_v29 = vpop.eup %3733  ;;  %v1278_v30 = vadd.f32 %v4415_v28, %v1277_v27 }
 0x20b   : > { %v3736_v31 = vpop.eup %3735  ;;  %3217 = vmatprep.mubr.f32.mxu0 %v3734_v29 }
 0x20c   : > { %3745 = vtanh.f32 %v1278_v30  ;;  %v3103_v32 = vpop.f32.mrb[30].mxu1  ;;  %3218 = vmatmul.mubr.f32.gmra.mrb[86].mxu0 %v3736_v31 }
 0x20d   : > { %3747 = vtanh.f32 %v1283_v26  ;;  %v1293_v33 = vadd.f32 %v3103_v32, %v4415_v28  ;;  %v1287_v34 = vpop.f32.mrb[31].mxu1 }
 0x20e   : > { %v3738_v35 = vpop.eup %3737  ;;  %v1288_v36 = vadd.f32 %v4415_v28, %v1287_v34 }
 0x20f   : > { %v3740_v37 = vpop.eup %3739  ;;  %3220 = vmatprep.mubr.f32.mxu0 %v3738_v35 }
 0x210   : > { %3749 = vtanh.f32 %v1288_v36  ;;  %v3106_v38 = vpop.f32.mrb[32].mxu1  ;;  %3221 = vmatmul.mubr.f32.gmra.mrb[88].mxu0 %v3740_v37 }
 0x211   : > { %3751 = vtanh.f32 %v1293_v33  ;;  %v1303_v39 = vadd.f32 %v3106_v38, %v4415_v28  ;;  %v1297_v40 = vpop.f32.mrb[33].mxu1 }
 0x212   : > { %v3742_v41 = vpop.eup %3741  ;;  %v1298_v42 = vadd.f32 %v4415_v28, %v1297_v40 }
 0x213   : > { %v3744_v43 = vpop.eup %3743  ;;  %3223 = vmatprep.mubr.f32.mxu0 %v3742_v41 }
 0x214   : > { %3753 = vtanh.f32 %v1298_v42  ;;  %v3109_v44 = vpop.f32.mrb[34].mxu1  ;;  %3224 = vmatmul.mubr.f32.gmra.mrb[90].mxu0 %v3744_v43  ;;  %v2006_v42 = vld [vmem:[%s4795_s7 + $0x70] sm:$0xff]  ;;  %v2007_v43 = vld [vmem:[%s4795_s7 + $0x78] sm:$0xff] }
 0x215   : > { %3755 = vtanh.f32 %v1303_v39  ;;  %v1313_v45 = vadd.f32 %v3109_v44, %v4415_v28  ;;  %v1307_v46 = vpop.f32.mrb[35].mxu1 }
 0x216   : > { %v3746_v47 = vpop.eup %3745  ;;  %v1308_v48 = vadd.f32 %v4415_v28, %v1307_v46  ;;  %v3500_v46 = vpack.c.bf16 %v2007_v43, %v2006_v42 }
 0x217   : > { %v3748_v49 = vpop.eup %3747  ;;  %3226 = vmatprep.mubr.f32.mxu0 %v3746_v47 }
 0x218   : > { %3757 = vtanh.f32 %v1308_v48  ;;  %v3112_v50 = vpop.f32.mrb[36].mxu1  ;;  %3227 = vmatmul.mubr.f32.gmra.mrb[92].mxu0 %v3748_v49  ;;  %3511 = vmatprep.subr.bf16.mxu1 %v3500_v46 }
 0x219   : > { %3759 = vtanh.f32 %v1313_v45  ;;  %v1323_v51 = vadd.f32 %v3112_v50, %v4415_v28  ;;  %v1317_v52 = vpop.f32.mrb[37].mxu1  ;;  %3501 = vmatprep.subr.bf16.mxu0 %v3500_v46  ;;  %3519 = vmatpush3.bf16.msra.mxu1 %v3500_v46 }
 0x21a   : > { %v3750_v53 = vpop.eup %3749  ;;  %v1318_v54 = vadd.f32 %v4415_v28, %v1317_v52  ;;  %3503 = vmatpush3.bf16.msra.mxu0 %v3500_v46 }
 0x21b   : > { %v3752_v55 = vpop.eup %3751  ;;  %3229 = vmatprep.mubr.f32.mxu0 %v3750_v53 }
 0x21c   : > { %3761 = vtanh.f32 %v1318_v54  ;;  %v3115_v56 = vpop.f32.mrb[38].mxu1  ;;  %3230 = vmatmul.mubr.f32.gmra.mrb[94].mxu0 %v3752_v55 }
 0x21d   : > { %3763 = vtanh.f32 %v1323_v51  ;;  %v1333_v57 = vadd.f32 %v3115_v56, %v4415_v28  ;;  %v1327_v58 = vpop.f32.mrb[39].mxu1 }
 0x21e   : > { %v3754_v59 = vpop.eup %3753  ;;  %v1328_v60 = vadd.f32 %v4415_v28, %v1327_v58 }
 0x21f   : > { %v3756_v61 = vpop.eup %3755  ;;  %3232 = vmatprep.mubr.f32.mxu0 %v3754_v59 }
 0x220   : > { %3765 = vtanh.f32 %v1328_v60  ;;  %v3118_v62 = vpop.f32.mrb[40].mxu1  ;;  %3233 = vmatmul.mubr.f32.gmra.mrb[96].mxu0 %v3756_v61 }
 0x221   : > { %3767 = vtanh.f32 %v1333_v57  ;;  %v1343_v63 = vadd.f32 %v3118_v62, %v4415_v28  ;;  %v1337_v0 = vpop.f32.mrb[41].mxu1 }
 0x222   : > { %v3758_v1 = vpop.eup %3757  ;;  %v1338_v2 = vadd.f32 %v4415_v28, %v1337_v0 }
 0x223   : > { %v3760_v3 = vpop.eup %3759  ;;  %3235 = vmatprep.mubr.f32.mxu0 %v3758_v1 }
 0x224   : > { %3769 = vtanh.f32 %v1338_v2  ;;  %v3121_v4 = vpop.f32.mrb[42].mxu1  ;;  %3236 = vmatmul.mubr.f32.gmra.mrb[98].mxu0 %v3760_v3 }
 0x225   : > { %3771 = vtanh.f32 %v1343_v63  ;;  %v1353_v5 = vadd.f32 %v3121_v4, %v4415_v28  ;;  %v1347_v6 = vpop.f32.mrb[43].mxu1 }
 0x226   : > { %v3762_v7 = vpop.eup %3761  ;;  %v1348_v8 = vadd.f32 %v4415_v28, %v1347_v6 }
 0x227   : > { %v3764_v9 = vpop.eup %3763  ;;  %3238 = vmatprep.mubr.f32.mxu0 %v3762_v7 }
 0x228   : > { %3773 = vtanh.f32 %v1348_v8  ;;  %v3124_v10 = vpop.f32.mrb[44].mxu1  ;;  %3239 = vmatmul.mubr.f32.gmra.mrb[100].mxu0 %v3764_v9 }
 0x229   : > { %3775 = vtanh.f32 %v1353_v5  ;;  %v1363_v11 = vadd.f32 %v3124_v10, %v4415_v28  ;;  %v1357_v12 = vpop.f32.mrb[45].mxu1 }
 0x22a   : > { %v3766_v13 = vpop.eup %3765  ;;  %v1358_v14 = vadd.f32 %v4415_v28, %v1357_v12 }
 0x22b   : > { %v3768_v15 = vpop.eup %3767  ;;  %3241 = vmatprep.mubr.f32.mxu0 %v3766_v13 }
 0x22c   : > { %3777 = vtanh.f32 %v1358_v14  ;;  %v3127_v16 = vpop.f32.mrb[46].mxu1  ;;  %3242 = vmatmul.mubr.f32.gmra.mrb[102].mxu0 %v3768_v15 }
 0x22d   : > { %3779 = vtanh.f32 %v1363_v11  ;;  %v1373_v17 = vadd.f32 %v3127_v16, %v4415_v28  ;;  %v1367_v18 = vpop.f32.mrb[47].mxu1 }
 0x22e   : > { %v3770_v19 = vpop.eup %3769  ;;  %v1368_v20 = vadd.f32 %v4415_v28, %v1367_v18 }
 0x22f   : > { %v3772_v21 = vpop.eup %3771  ;;  %3244 = vmatprep.mubr.f32.mxu0 %v3770_v19 }
 0x230   : > { %3781 = vtanh.f32 %v1368_v20  ;;  %v3130_v22 = vpop.f32.mrb[48].mxu1  ;;  %3245 = vmatmul.mubr.f32.gmra.mrb[104].mxu0 %v3772_v21 }
 0x231   : > { %3783 = vtanh.f32 %v1373_v17  ;;  %v1383_v23 = vadd.f32 %v3130_v22, %v4415_v28  ;;  %v1377_v24 = vpop.f32.mrb[49].mxu1 }
 0x232   : > { %v3774_v25 = vpop.eup %3773  ;;  %v1378_v26 = vadd.f32 %v4415_v28, %v1377_v24 }
 0x233   : > { %v3776_v27 = vpop.eup %3775  ;;  %3247 = vmatprep.mubr.f32.mxu0 %v3774_v25 }
 0x234   : > { %3785 = vtanh.f32 %v1378_v26  ;;  %v3133_v29 = vpop.f32.mrb[50].mxu1  ;;  %3248 = vmatmul.mubr.f32.gmra.mrb[106].mxu0 %v3776_v27 }
 0x235   : > { %3787 = vtanh.f32 %v1383_v23  ;;  %v1393_v30 = vadd.f32 %v3133_v29, %v4415_v28  ;;  %v1387_v31 = vpop.f32.mrb[51].mxu1 }
 0x236   : > { %v3778_v32 = vpop.eup %3777  ;;  %v1388_v33 = vadd.f32 %v4415_v28, %v1387_v31 }
 0x237   : > { %v3780_v34 = vpop.eup %3779  ;;  %3250 = vmatprep.mubr.f32.mxu0 %v3778_v32 }
 0x238   : > { %3789 = vtanh.f32 %v1388_v33  ;;  %v3136_v35 = vpop.f32.mrb[52].mxu1  ;;  %3251 = vmatmul.mubr.f32.gmra.mrb[108].mxu0 %v3780_v34 }
 0x239   : > { %3791 = vtanh.f32 %v1393_v30  ;;  %v1403_v36 = vadd.f32 %v3136_v35, %v4415_v28  ;;  %v1397_v37 = vpop.f32.mrb[53].mxu1 }
 0x23a   : > { %v3782_v38 = vpop.eup %3781  ;;  %v1398_v39 = vadd.f32 %v4415_v28, %v1397_v37 }
 0x23b   : > { %v3784_v40 = vpop.eup %3783  ;;  %3253 = vmatprep.mubr.f32.mxu0 %v3782_v38 }
 0x23c   : > { %3793 = vtanh.f32 %v1398_v39  ;;  %v3139_v41 = vpop.f32.mrb[54].mxu1  ;;  %3254 = vmatmul.mubr.f32.gmra.mrb[110].mxu0 %v3784_v40 }
 0x23d   : > { %3795 = vtanh.f32 %v1403_v36  ;;  %v1413_v44 = vadd.f32 %v3139_v41, %v4415_v28  ;;  %v1407_v45 = vpop.f32.mrb[55].mxu1 }
 0x23e   : > { %v3786_v47 = vpop.eup %3785  ;;  %v1408_v48 = vadd.f32 %v4415_v28, %v1407_v45 }
 0x23f   : > { %v3788_v49 = vpop.eup %3787  ;;  %3256 = vmatprep.mubr.f32.mxu0 %v3786_v47 }
 0x240   : > { %3797 = vtanh.f32 %v1408_v48  ;;  %v3142_v50 = vpop.f32.mrb[56].mxu1  ;;  %3257 = vmatmul.mubr.f32.gmra.mrb[112].mxu0 %v3788_v49 }
 0x241   : > { %3799 = vtanh.f32 %v1413_v44  ;;  %v1423_v51 = vadd.f32 %v3142_v50, %v4415_v28  ;;  %v1417_v52 = vpop.f32.mrb[57].mxu1 }
 0x242   : > { %v3790_v53 = vpop.eup %3789  ;;  %v1418_v54 = vadd.f32 %v4415_v28, %v1417_v52 }
 0x243   : > { %v3792_v55 = vpop.eup %3791  ;;  %3259 = vmatprep.mubr.f32.mxu0 %v3790_v53 }
 0x244   : > { %3801 = vtanh.f32 %v1418_v54  ;;  %v3145_v56 = vpop.f32.mrb[58].mxu1  ;;  %3260 = vmatmul.mubr.f32.gmra.mrb[114].mxu0 %v3792_v55 }
 0x245   : > { %3803 = vtanh.f32 %v1423_v51  ;;  %v1433_v57 = vadd.f32 %v3145_v56, %v4415_v28  ;;  %v1427_v58 = vpop.f32.mrb[59].mxu1 }
 0x246   : > { %v3794_v59 = vpop.eup %3793  ;;  %v1428_v60 = vadd.f32 %v4415_v28, %v1427_v58 }
 0x247   : > { %v3796_v61 = vpop.eup %3795  ;;  %3262 = vmatprep.mubr.f32.mxu0 %v3794_v59 }
 0x248   : > { %3805 = vtanh.f32 %v1428_v60  ;;  %v3148_v62 = vpop.f32.mrb[60].mxu1  ;;  %3263 = vmatmul.mubr.f32.gmra.mrb[116].mxu0 %v3796_v61 }
 0x249   : > { %3807 = vtanh.f32 %v1433_v57  ;;  %v1443_v63 = vadd.f32 %v3148_v62, %v4415_v28  ;;  %v1437_v0 = vpop.f32.mrb[61].mxu1 }
 0x24a   : > { %v3798_v1 = vpop.eup %3797  ;;  %v1438_v2 = vadd.f32 %v4415_v28, %v1437_v0 }
 0x24b   : > { %v3800_v3 = vpop.eup %3799  ;;  %3265 = vmatprep.mubr.f32.mxu0 %v3798_v1 }
 0x24c   : > { %3809 = vtanh.f32 %v1438_v2  ;;  %v3151_v4 = vpop.f32.mrb[62].mxu1  ;;  %3266 = vmatmul.mubr.f32.gmra.mrb[118].mxu0 %v3800_v3 }
 0x24d   : > { %3811 = vtanh.f32 %v1443_v63  ;;  %v1453_v5 = vadd.f32 %v3151_v4, %v4415_v28  ;;  %v1447_v6 = vpop.f32.mrb[63].mxu1 }
 0x24e   : > { %v3802_v7 = vpop.eup %3801  ;;  %v1448_v8 = vadd.f32 %v4415_v28, %v1447_v6  ;;  %v4532_v28 = vld [vmem:[%s4794_s6] ss:$0 sm:$0xff] }
 0x24f   : > { %v3804_v9 = vpop.eup %3803  ;;  %3268 = vmatprep.mubr.f32.mxu0 %v3802_v7 }
 0x250   : > { %3813 = vtanh.f32 %v1448_v8  ;;  %3269 = vmatmul.mubr.f32.gmra.mrb[120].mxu0 %v3804_v9 }
 0x251   : > { %3815 = vtanh.f32 %v1453_v5 }
 0x252   : > { %v3806_v10 = vpop.eup %3805 }
 0x253   : > { %v3808_v11 = vpop.eup %3807  ;;  %3271 = vmatprep.mubr.f32.mxu0 %v3806_v10 }
 0x254   : > { %3272 = vmatmul.mubr.f32.gmra.mrb[122].mxu0 %v3808_v11 }
 0x256   : > { %v3810_v12 = vpop.eup %3809 }
 0x257   : > { %v3812_v13 = vpop.eup %3811  ;;  %3274 = vmatprep.mubr.f32.mxu0 %v3810_v12 }
 0x258   : > { %3275 = vmatmul.mubr.f32.gmra.mrb[124].mxu0 %v3812_v13 }
 0x25a   : > { %v3814_v14 = vpop.eup %3813 }
 0x25b   : > { %v3816_v15 = vpop.eup %3815  ;;  %3277 = vmatprep.mubr.f32.mxu0 %v3814_v14 }
 0x25c   : > { %3278 = vmatmul.mubr.f32.gmra.mrb[126].mxu0 %v3816_v15 }
 0x2b3   : > { %v3186_v16 = vpop.f32.mrb[64].mxu0 }
 0x2b4   : > { %v1615_v17 = vadd.f32 %v3186_v16, %v4532_v28  ;;  %v1609_v18 = vpop.f32.mrb[65].mxu0 }
 0x2b5   : > { %v1610_v19 = vadd.f32 %v4532_v28, %v1609_v18 }
 0x2b7   : > { %3817 = vtanh.f32 %v1610_v19  ;;  %v3189_v20 = vpop.f32.mrb[66].mxu0 }
 0x2b8   : > { %3819 = vtanh.f32 %v1615_v17  ;;  %v1625_v21 = vadd.f32 %v3189_v20, %v4532_v28  ;;  %v1619_v22 = vpop.f32.mrb[67].mxu0 }
 0x2b9   : > { %v1620_v23 = vadd.f32 %v4532_v28, %v1619_v22 }
 0x2bb   : > { %3821 = vtanh.f32 %v1620_v23  ;;  %v3192_v24 = vpop.f32.mrb[68].mxu0 }
 0x2bc   : > { %3823 = vtanh.f32 %v1625_v21  ;;  %v1635_v25 = vadd.f32 %v3192_v24, %v4532_v28  ;;  %v1629_v26 = vpop.f32.mrb[69].mxu0 }
 0x2bd   : > { %v1630_v27 = vadd.f32 %v4532_v28, %v1629_v26 }
 0x2bf   : > { %3825 = vtanh.f32 %v1630_v27  ;;  %v3195_v29 = vpop.f32.mrb[70].mxu0 }
 0x2c0   : > { %3827 = vtanh.f32 %v1635_v25  ;;  %v1645_v30 = vadd.f32 %v3195_v29, %v4532_v28  ;;  %v1639_v31 = vpop.f32.mrb[71].mxu0 }
 0x2c1   : > { %v3818_v32 = vpop.eup %3817  ;;  %v1640_v33 = vadd.f32 %v4532_v28, %v1639_v31 }
 0x2c2   : > { %v3820_v34 = vpop.eup %3819  ;;  %3312 = vmatprep.mubr.f32.mxu0 %v3818_v32 }
 0x2c3   : > { %3829 = vtanh.f32 %v1640_v33  ;;  %v3198_v35 = vpop.f32.mrb[72].mxu0  ;;  %3313 = vmatmul.mubr.f32.vlgmr.msra.gmra.mrb[128].mxu0 %v3820_v34 }
 0x2c4   : > { %3831 = vtanh.f32 %v1645_v30  ;;  %v1655_v36 = vadd.f32 %v3198_v35, %v4532_v28  ;;  %v1649_v37 = vpop.f32.mrb[73].mxu0 }
 0x2c5   : > { %v3822_v38 = vpop.eup %3821  ;;  %v1650_v39 = vadd.f32 %v4532_v28, %v1649_v37 }
 0x2c6   : > { %v3824_v40 = vpop.eup %3823  ;;  %3315 = vmatprep.mubr.f32.mxu0 %v3822_v38 }
 0x2c7   : > { %3833 = vtanh.f32 %v1650_v39  ;;  %v3201_v41 = vpop.f32.mrb[74].mxu0  ;;  %3316 = vmatmul.mubr.f32.gmra.mrb[130].mxu0 %v3824_v40 }
 0x2c8   : > { %3835 = vtanh.f32 %v1655_v36  ;;  %v1665_v42 = vadd.f32 %v3201_v41, %v4532_v28  ;;  %v1659_v43 = vpop.f32.mrb[75].mxu0 }
 0x2c9   : > { %v3826_v44 = vpop.eup %3825  ;;  %v1660_v45 = vadd.f32 %v4532_v28, %v1659_v43 }
 0x2ca   : > { %v3828_v46 = vpop.eup %3827  ;;  %3318 = vmatprep.mubr.f32.mxu0 %v3826_v44 }
 0x2cb   : > { %3837 = vtanh.f32 %v1660_v45  ;;  %v3204_v47 = vpop.f32.mrb[76].mxu0  ;;  %3319 = vmatmul.mubr.f32.gmra.mrb[132].mxu0 %v3828_v46 }
 0x2cc   : > { %3839 = vtanh.f32 %v1665_v42  ;;  %v1675_v48 = vadd.f32 %v3204_v47, %v4532_v28  ;;  %v1669_v49 = vpop.f32.mrb[77].mxu0 }
 0x2cd   : > { %v3830_v50 = vpop.eup %3829  ;;  %v1670_v51 = vadd.f32 %v4532_v28, %v1669_v49 }
 0x2ce   : > { %v3832_v52 = vpop.eup %3831  ;;  %3321 = vmatprep.mubr.f32.mxu1 %v3830_v50 }
 0x2cf   : > { %3841 = vtanh.f32 %v1670_v51  ;;  %v3207_v53 = vpop.f32.mrb[78].mxu0  ;;  %3322 = vmatmul.mubr.f32.vlgmr.msra.gmra.mrb[64].mxu1 %v3832_v52 }
 0x2d0   : > { %3843 = vtanh.f32 %v1675_v48  ;;  %v1685_v54 = vadd.f32 %v3207_v53, %v4532_v28  ;;  %v1679_v55 = vpop.f32.mrb[79].mxu0 }
 0x2d1   : > { %v3834_v56 = vpop.eup %3833  ;;  %v1680_v57 = vadd.f32 %v4532_v28, %v1679_v55 }
 0x2d2   : > { %v3836_v58 = vpop.eup %3835  ;;  %3324 = vmatprep.mubr.f32.mxu1 %v3834_v56 }
 0x2d3   : > { %3845 = vtanh.f32 %v1680_v57  ;;  %v3210_v59 = vpop.f32.mrb[80].mxu0  ;;  %3325 = vmatmul.mubr.f32.gmra.mrb[66].mxu1 %v3836_v58 }
 0x2d4   : > { %3847 = vtanh.f32 %v1685_v54  ;;  %v1695_v60 = vadd.f32 %v3210_v59, %v4532_v28  ;;  %v1689_v61 = vpop.f32.mrb[81].mxu0 }
 0x2d5   : > { %v3838_v62 = vpop.eup %3837  ;;  %v1690_v63 = vadd.f32 %v4532_v28, %v1689_v61 }
 0x2d6   : > { %v3840_v0 = vpop.eup %3839  ;;  %3327 = vmatprep.mubr.f32.mxu1 %v3838_v62 }
 0x2d7   : > { %3849 = vtanh.f32 %v1690_v63  ;;  %v3213_v1 = vpop.f32.mrb[82].mxu0  ;;  %3328 = vmatmul.mubr.f32.gmra.mrb[68].mxu1 %v3840_v0 }
 0x2d8   : > { %3851 = vtanh.f32 %v1695_v60  ;;  %v1705_v2 = vadd.f32 %v3213_v1, %v4532_v28  ;;  %v1699_v3 = vpop.f32.mrb[83].mxu0 }
 0x2d9   : > { %v3842_v4 = vpop.eup %3841  ;;  %v1700_v5 = vadd.f32 %v4532_v28, %v1699_v3 }
 0x2da   : > { %v3844_v6 = vpop.eup %3843  ;;  %3330 = vmatprep.mubr.f32.mxu1 %v3842_v4 }
 0x2db   : > { %3853 = vtanh.f32 %v1700_v5  ;;  %v3216_v7 = vpop.f32.mrb[84].mxu0  ;;  %3331 = vmatmul.mubr.f32.gmra.mrb[70].mxu1 %v3844_v6 }
 0x2dc   : > { %3855 = vtanh.f32 %v1705_v2  ;;  %v1715_v8 = vadd.f32 %v3216_v7, %v4532_v28  ;;  %v1709_v9 = vpop.f32.mrb[85].mxu0 }
 0x2dd   : > { %v3846_v10 = vpop.eup %3845  ;;  %v1710_v11 = vadd.f32 %v4532_v28, %v1709_v9 }
 0x2de   : > { %v3848_v12 = vpop.eup %3847  ;;  %3333 = vmatprep.mubr.f32.mxu1 %v3846_v10 }
 0x2df   : > { %3857 = vtanh.f32 %v1710_v11  ;;  %v3219_v13 = vpop.f32.mrb[86].mxu0  ;;  %3334 = vmatmul.mubr.f32.gmra.mrb[72].mxu1 %v3848_v12 }
 0x2e0   : > { %3859 = vtanh.f32 %v1715_v8  ;;  %v1725_v14 = vadd.f32 %v3219_v13, %v4532_v28  ;;  %v1719_v15 = vpop.f32.mrb[87].mxu0 }
 0x2e1   : > { %v3850_v16 = vpop.eup %3849  ;;  %v1720_v17 = vadd.f32 %v4532_v28, %v1719_v15 }
 0x2e2   : > { %v3852_v18 = vpop.eup %3851  ;;  %3336 = vmatprep.mubr.f32.mxu1 %v3850_v16 }
 0x2e3   : > { %3861 = vtanh.f32 %v1720_v17  ;;  %v3222_v19 = vpop.f32.mrb[88].mxu0  ;;  %3337 = vmatmul.mubr.f32.gmra.mrb[74].mxu1 %v3852_v18 }
 0x2e4   : > { %3863 = vtanh.f32 %v1725_v14  ;;  %v1735_v20 = vadd.f32 %v3222_v19, %v4532_v28  ;;  %v1729_v21 = vpop.f32.mrb[89].mxu0 }
 0x2e5   : > { %v3854_v22 = vpop.eup %3853  ;;  %v1730_v23 = vadd.f32 %v4532_v28, %v1729_v21 }
 0x2e6   : > { %v3856_v24 = vpop.eup %3855  ;;  %3339 = vmatprep.mubr.f32.mxu1 %v3854_v22 }
 0x2e7   : > { %3865 = vtanh.f32 %v1730_v23  ;;  %v3225_v25 = vpop.f32.mrb[90].mxu0  ;;  %3340 = vmatmul.mubr.f32.gmra.mrb[76].mxu1 %v3856_v24 }
 0x2e8   : > { %3867 = vtanh.f32 %v1735_v20  ;;  %v1745_v26 = vadd.f32 %v3225_v25, %v4532_v28  ;;  %v1739_v27 = vpop.f32.mrb[91].mxu0 }
 0x2e9   : > { %v3858_v29 = vpop.eup %3857  ;;  %v1740_v30 = vadd.f32 %v4532_v28, %v1739_v27 }
 0x2ea   : > { %v3860_v31 = vpop.eup %3859  ;;  %3342 = vmatprep.mubr.f32.mxu1 %v3858_v29 }
 0x2eb   : > { %3869 = vtanh.f32 %v1740_v30  ;;  %v3228_v32 = vpop.f32.mrb[92].mxu0  ;;  %3343 = vmatmul.mubr.f32.gmra.mrb[78].mxu1 %v3860_v31 }
 0x2ec   : > { %3871 = vtanh.f32 %v1745_v26  ;;  %v1755_v33 = vadd.f32 %v3228_v32, %v4532_v28  ;;  %v1749_v34 = vpop.f32.mrb[93].mxu0 }
 0x2ed   : > { %v3862_v35 = vpop.eup %3861  ;;  %v1750_v36 = vadd.f32 %v4532_v28, %v1749_v34 }
 0x2ee   : > { %v3864_v37 = vpop.eup %3863  ;;  %3345 = vmatprep.mubr.f32.mxu1 %v3862_v35 }
 0x2ef   : > { %3873 = vtanh.f32 %v1750_v36  ;;  %v3231_v38 = vpop.f32.mrb[94].mxu0  ;;  %3346 = vmatmul.mubr.f32.gmra.mrb[80].mxu1 %v3864_v37 }
 0x2f0   : > { %3875 = vtanh.f32 %v1755_v33  ;;  %v1765_v39 = vadd.f32 %v3231_v38, %v4532_v28  ;;  %v1759_v40 = vpop.f32.mrb[95].mxu0 }
 0x2f1   : > { %v3866_v41 = vpop.eup %3865  ;;  %v1760_v42 = vadd.f32 %v4532_v28, %v1759_v40 }
 0x2f2   : > { %v3868_v43 = vpop.eup %3867  ;;  %3348 = vmatprep.mubr.f32.mxu1 %v3866_v41 }
 0x2f3   : > { %3877 = vtanh.f32 %v1760_v42  ;;  %v3234_v44 = vpop.f32.mrb[96].mxu0  ;;  %3349 = vmatmul.mubr.f32.gmra.mrb[82].mxu1 %v3868_v43 }
 0x2f4   : > { %3879 = vtanh.f32 %v1765_v39  ;;  %v1775_v45 = vadd.f32 %v3234_v44, %v4532_v28  ;;  %v1769_v46 = vpop.f32.mrb[97].mxu0 }
 0x2f5   : > { %v3870_v47 = vpop.eup %3869  ;;  %v1770_v48 = vadd.f32 %v4532_v28, %v1769_v46 }
 0x2f6   : > { %v3872_v49 = vpop.eup %3871  ;;  %3351 = vmatprep.mubr.f32.mxu1 %v3870_v47 }
 0x2f7   : > { %3881 = vtanh.f32 %v1770_v48  ;;  %v3237_v50 = vpop.f32.mrb[98].mxu0  ;;  %3352 = vmatmul.mubr.f32.gmra.mrb[84].mxu1 %v3872_v49 }
 0x2f8   : > { %3883 = vtanh.f32 %v1775_v45  ;;  %v1785_v51 = vadd.f32 %v3237_v50, %v4532_v28  ;;  %v1779_v52 = vpop.f32.mrb[99].mxu0 }
 0x2f9   : > { %v3874_v53 = vpop.eup %3873  ;;  %v1780_v54 = vadd.f32 %v4532_v28, %v1779_v52 }
 0x2fa   : > { %v3876_v55 = vpop.eup %3875  ;;  %3354 = vmatprep.mubr.f32.mxu1 %v3874_v53 }
 0x2fb   : > { %3885 = vtanh.f32 %v1780_v54  ;;  %v3240_v56 = vpop.f32.mrb[100].mxu0  ;;  %3355 = vmatmul.mubr.f32.gmra.mrb[86].mxu1 %v3876_v55 }
 0x2fc   : > { %3887 = vtanh.f32 %v1785_v51  ;;  %v1795_v57 = vadd.f32 %v3240_v56, %v4532_v28  ;;  %v1789_v58 = vpop.f32.mrb[101].mxu0 }
 0x2fd   : > { %v3878_v59 = vpop.eup %3877  ;;  %v1790_v60 = vadd.f32 %v4532_v28, %v1789_v58 }
 0x2fe   : > { %v3880_v61 = vpop.eup %3879  ;;  %3357 = vmatprep.mubr.f32.mxu1 %v3878_v59 }
 0x2ff   : > { %3889 = vtanh.f32 %v1790_v60  ;;  %v3243_v62 = vpop.f32.mrb[102].mxu0  ;;  %3358 = vmatmul.mubr.f32.gmra.mrb[88].mxu1 %v3880_v61 }
 0x300   : > { %3891 = vtanh.f32 %v1795_v57  ;;  %v1805_v63 = vadd.f32 %v3243_v62, %v4532_v28  ;;  %v1799_v0 = vpop.f32.mrb[103].mxu0 }
 0x301   : > { %v3882_v1 = vpop.eup %3881  ;;  %v1800_v2 = vadd.f32 %v4532_v28, %v1799_v0 }
 0x302   : > { %v3884_v3 = vpop.eup %3883  ;;  %3360 = vmatprep.mubr.f32.mxu1 %v3882_v1 }
 0x303   : > { %3893 = vtanh.f32 %v1800_v2  ;;  %v3246_v4 = vpop.f32.mrb[104].mxu0  ;;  %3361 = vmatmul.mubr.f32.gmra.mrb[90].mxu1 %v3884_v3 }
 0x304   : > { %3895 = vtanh.f32 %v1805_v63  ;;  %v1815_v5 = vadd.f32 %v3246_v4, %v4532_v28  ;;  %v1809_v6 = vpop.f32.mrb[105].mxu0 }
 0x305   : > { %v3886_v7 = vpop.eup %3885  ;;  %v1810_v8 = vadd.f32 %v4532_v28, %v1809_v6 }
 0x306   : > { %v3888_v9 = vpop.eup %3887  ;;  %3363 = vmatprep.mubr.f32.mxu1 %v3886_v7 }
 0x307   : > { %3897 = vtanh.f32 %v1810_v8  ;;  %v3249_v10 = vpop.f32.mrb[106].mxu0  ;;  %3364 = vmatmul.mubr.f32.gmra.mrb[92].mxu1 %v3888_v9 }
 0x308   : > { %3899 = vtanh.f32 %v1815_v5  ;;  %v1825_v11 = vadd.f32 %v3249_v10, %v4532_v28  ;;  %v1819_v12 = vpop.f32.mrb[107].mxu0 }
 0x309   : > { %v3890_v13 = vpop.eup %3889  ;;  %v1820_v14 = vadd.f32 %v4532_v28, %v1819_v12 }
 0x30a   : > { %v3892_v15 = vpop.eup %3891  ;;  %3366 = vmatprep.mubr.f32.mxu1 %v3890_v13 }
 0x30b   : > { %3901 = vtanh.f32 %v1820_v14  ;;  %v3252_v16 = vpop.f32.mrb[108].mxu0  ;;  %3367 = vmatmul.mubr.f32.gmra.mrb[94].mxu1 %v3892_v15 }
 0x30c   : > { %3903 = vtanh.f32 %v1825_v11  ;;  %v1835_v17 = vadd.f32 %v3252_v16, %v4532_v28  ;;  %v1829_v18 = vpop.f32.mrb[109].mxu0 }
 0x30d   : > { %v3894_v19 = vpop.eup %3893  ;;  %v1830_v20 = vadd.f32 %v4532_v28, %v1829_v18 }
 0x30e   : > { %v3896_v21 = vpop.eup %3895  ;;  %3369 = vmatprep.mubr.f32.mxu1 %v3894_v19 }
 0x30f   : > { %3905 = vtanh.f32 %v1830_v20  ;;  %v3255_v22 = vpop.f32.mrb[110].mxu0  ;;  %3370 = vmatmul.mubr.f32.gmra.mrb[96].mxu1 %v3896_v21 }
 0x310   : > { %3907 = vtanh.f32 %v1835_v17  ;;  %v1845_v23 = vadd.f32 %v3255_v22, %v4532_v28  ;;  %v1839_v24 = vpop.f32.mrb[111].mxu0 }
 0x311   : > { %v3898_v25 = vpop.eup %3897  ;;  %v1840_v26 = vadd.f32 %v4532_v28, %v1839_v24 }
 0x312   : > { %v3900_v27 = vpop.eup %3899  ;;  %3372 = vmatprep.mubr.f32.mxu1 %v3898_v25 }
 0x313   : > { %3909 = vtanh.f32 %v1840_v26  ;;  %v3258_v29 = vpop.f32.mrb[112].mxu0  ;;  %3373 = vmatmul.mubr.f32.gmra.mrb[98].mxu1 %v3900_v27 }
 0x314   : > { %3911 = vtanh.f32 %v1845_v23  ;;  %v1855_v30 = vadd.f32 %v3258_v29, %v4532_v28  ;;  %v1849_v31 = vpop.f32.mrb[113].mxu0 }
 0x315   : > { %v3902_v32 = vpop.eup %3901  ;;  %v1850_v33 = vadd.f32 %v4532_v28, %v1849_v31 }
 0x316   : > { %v3904_v34 = vpop.eup %3903  ;;  %3375 = vmatprep.mubr.f32.mxu1 %v3902_v32 }
 0x317   : > { %3913 = vtanh.f32 %v1850_v33  ;;  %v3261_v35 = vpop.f32.mrb[114].mxu0  ;;  %3376 = vmatmul.mubr.f32.gmra.mrb[100].mxu1 %v3904_v34 }
 0x318   : > { %3915 = vtanh.f32 %v1855_v30  ;;  %v1865_v36 = vadd.f32 %v3261_v35, %v4532_v28  ;;  %v1859_v37 = vpop.f32.mrb[115].mxu0 }
 0x319   : > { %v3906_v38 = vpop.eup %3905  ;;  %v1860_v39 = vadd.f32 %v4532_v28, %v1859_v37 }
 0x31a   : > { %v3908_v40 = vpop.eup %3907  ;;  %3378 = vmatprep.mubr.f32.mxu1 %v3906_v38 }
 0x31b   : > { %3917 = vtanh.f32 %v1860_v39  ;;  %v3264_v41 = vpop.f32.mrb[116].mxu0  ;;  %3379 = vmatmul.mubr.f32.gmra.mrb[102].mxu1 %v3908_v40 }
 0x31c   : > { %3919 = vtanh.f32 %v1865_v36  ;;  %v1875_v42 = vadd.f32 %v3264_v41, %v4532_v28  ;;  %v1869_v43 = vpop.f32.mrb[117].mxu0 }
 0x31d   : > { %v3910_v44 = vpop.eup %3909  ;;  %v1870_v45 = vadd.f32 %v4532_v28, %v1869_v43 }
 0x31e   : > { %v3912_v46 = vpop.eup %3911  ;;  %3381 = vmatprep.mubr.f32.mxu1 %v3910_v44 }
 0x31f   : > { %3921 = vtanh.f32 %v1870_v45  ;;  %v3267_v47 = vpop.f32.mrb[118].mxu0  ;;  %3382 = vmatmul.mubr.f32.gmra.mrb[104].mxu1 %v3912_v46 }
 0x320   : > { %3923 = vtanh.f32 %v1875_v42  ;;  %v1885_v48 = vadd.f32 %v3267_v47, %v4532_v28  ;;  %v1879_v49 = vpop.f32.mrb[119].mxu0 }
 0x321   : > { %v3914_v50 = vpop.eup %3913  ;;  %v1880_v51 = vadd.f32 %v4532_v28, %v1879_v49 }
 0x322   : > { %v3916_v52 = vpop.eup %3915  ;;  %3384 = vmatprep.mubr.f32.mxu1 %v3914_v50 }
 0x323   : > { %3925 = vtanh.f32 %v1880_v51  ;;  %v3270_v53 = vpop.f32.mrb[120].mxu0  ;;  %3385 = vmatmul.mubr.f32.gmra.mrb[106].mxu1 %v3916_v52 }
 0x324   : > { %3927 = vtanh.f32 %v1885_v48  ;;  %v1895_v54 = vadd.f32 %v3270_v53, %v4532_v28  ;;  %v1889_v55 = vpop.f32.mrb[121].mxu0 }
 0x325   : > { %v3918_v56 = vpop.eup %3917  ;;  %v1890_v57 = vadd.f32 %v4532_v28, %v1889_v55 }
 0x326   : > { %v3920_v58 = vpop.eup %3919  ;;  %3387 = vmatprep.mubr.f32.mxu1 %v3918_v56 }
 0x327   : > { %3929 = vtanh.f32 %v1890_v57  ;;  %v3273_v59 = vpop.f32.mrb[122].mxu0  ;;  %3388 = vmatmul.mubr.f32.gmra.mrb[108].mxu1 %v3920_v58 }
 0x328   : > { %3931 = vtanh.f32 %v1895_v54  ;;  %v1905_v60 = vadd.f32 %v3273_v59, %v4532_v28  ;;  %v1899_v61 = vpop.f32.mrb[123].mxu0 }
 0x329   : > { %v3922_v62 = vpop.eup %3921  ;;  %v1900_v63 = vadd.f32 %v4532_v28, %v1899_v61 }
 0x32a   : > { %v3924_v0 = vpop.eup %3923  ;;  %3390 = vmatprep.mubr.f32.mxu1 %v3922_v62 }
 0x32b   : > { %3933 = vtanh.f32 %v1900_v63  ;;  %v3276_v1 = vpop.f32.mrb[124].mxu0  ;;  %3391 = vmatmul.mubr.f32.gmra.mrb[110].mxu1 %v3924_v0 }
 0x32c   : > { %3935 = vtanh.f32 %v1905_v60  ;;  %v1915_v2 = vadd.f32 %v3276_v1, %v4532_v28  ;;  %v1909_v3 = vpop.f32.mrb[125].mxu0 }
 0x32d   : > { %v3926_v4 = vpop.eup %3925  ;;  %v1910_v5 = vadd.f32 %v4532_v28, %v1909_v3 }
 0x32e   : > { %v3928_v6 = vpop.eup %3927  ;;  %3393 = vmatprep.mubr.f32.mxu1 %v3926_v4 }
 0x32f   : > { %3937 = vtanh.f32 %v1910_v5  ;;  %v3279_v7 = vpop.f32.mrb[126].mxu0  ;;  %3394 = vmatmul.mubr.f32.gmra.mrb[112].mxu1 %v3928_v6 }
 0x330   : > { %3939 = vtanh.f32 %v1915_v2  ;;  %v1925_v8 = vadd.f32 %v3279_v7, %v4532_v28  ;;  %v1919_v9 = vpop.f32.mrb[127].mxu0 }
 0x331   : > { %v3930_v10 = vpop.eup %3929  ;;  %v1920_v11 = vadd.f32 %v4532_v28, %v1919_v9  ;;  %v4604_v28 = vld [vmem:[%s4796_s8] ss:$0 sm:$0xff] }
 0x332   : > { %v3932_v12 = vpop.eup %3931  ;;  %3396 = vmatprep.mubr.f32.mxu1 %v3930_v10 }
 0x333   : > { %3941 = vtanh.f32 %v1920_v11  ;;  %3397 = vmatmul.mubr.f32.gmra.mrb[114].mxu1 %v3932_v12 }
 0x334   : > { %3943 = vtanh.f32 %v1925_v8 }
 0x335   : > { %v3934_v13 = vpop.eup %3933 }
 0x336   : > { %v3936_v14 = vpop.eup %3935  ;;  %3399 = vmatprep.mubr.f32.mxu1 %v3934_v13 }
 0x337   : > { %3400 = vmatmul.mubr.f32.gmra.mrb[116].mxu1 %v3936_v14 }
 0x339   : > { %v3938_v15 = vpop.eup %3937 }
 0x33a   : > { %v3940_v16 = vpop.eup %3939  ;;  %3402 = vmatprep.mubr.f32.mxu1 %v3938_v15 }
 0x33b   : > { %3403 = vmatmul.mubr.f32.gmra.mrb[118].mxu1 %v3940_v16 }
 0x33d   : > { %v3942_v17 = vpop.eup %3941 }
 0x33e   : > { %v3944_v18 = vpop.eup %3943  ;;  %3405 = vmatprep.mubr.f32.mxu1 %v3942_v17 }
 0x33f   : > { %3406 = vmatmul.mubr.f32.gmra.mrb[120].mxu1 %v3944_v18 }
 0x396   : > { %v3314_v19 = vpop.f32.mrb[128].mxu0 }
 0x397   : > { %v2087_v20 = vadd.f32 %v3314_v19, %v4604_v28  ;;  %v2081_v21 = vpop.f32.mrb[129].mxu0 }
 0x398   : > { %v2082_v22 = vadd.f32 %v4604_v28, %v2081_v21 }
 0x399   : > { %2401 = vst [vmem:[%s4608_s24 + $0x8] sm:$0xff] %v2087_v20 }
 0x39a   : > { %2400 = vst [vmem:[%s4608_s24] sm:$0xff] %v2082_v22  ;;  %v3317_v23 = vpop.f32.mrb[130].mxu0 }
 0x39b   : > { %v2097_v24 = vadd.f32 %v3317_v23, %v4604_v28  ;;  %v2091_v25 = vpop.f32.mrb[131].mxu0 }
 0x39c   : > { %v2092_v26 = vadd.f32 %v4604_v28, %v2091_v25 }
 0x39d   : > { %2403 = vst [vmem:[%s4608_s24 + $0x18] sm:$0xff] %v2097_v24 }
 0x39e   : > { %2402 = vst [vmem:[%s4608_s24 + $0x10] sm:$0xff] %v2092_v26  ;;  %v3320_v27 = vpop.f32.mrb[132].mxu0 }
 0x39f   : > { %v2107_v29 = vadd.f32 %v3320_v27, %v4604_v28  ;;  %v2101_v30 = vpop.f32.mrb[133].mxu0 }
 0x3a0   : > { %v2102_v31 = vadd.f32 %v4604_v28, %v2101_v30 }
 0x3a1   : > { %2405 = vst [vmem:[%s4608_s24 + $0x28] sm:$0xff] %v2107_v29 }
 0x3a2   : > { %2404 = vst [vmem:[%s4608_s24 + $0x20] sm:$0xff] %v2102_v31  ;;  %v3323_v32 = vpop.f32.mrb[64].mxu1 }
 0x3a3   : > { %v2117_v33 = vadd.f32 %v3323_v32, %v4604_v28  ;;  %v2111_v34 = vpop.f32.mrb[65].mxu1 }
 0x3a4   : > { %v2112_v35 = vadd.f32 %v4604_v28, %v2111_v34 }
 0x3a5   : > { %2407 = vst [vmem:[%s4608_s24 + $0x38] sm:$0xff] %v2117_v33 }
 0x3a6   : > { %2406 = vst [vmem:[%s4608_s24 + $0x30] sm:$0xff] %v2112_v35  ;;  %v3326_v36 = vpop.f32.mrb[66].mxu1 }
 0x3a7   : > { %v2127_v37 = vadd.f32 %v3326_v36, %v4604_v28  ;;  %v2121_v38 = vpop.f32.mrb[67].mxu1 }
 0x3a8   : > { %v2122_v39 = vadd.f32 %v4604_v28, %v2121_v38 }
 0x3a9   : > { %2409 = vst [vmem:[%s4608_s24 + $0x48] sm:$0xff] %v2127_v37 }
 0x3aa   : > { %2408 = vst [vmem:[%s4608_s24 + $0x40] sm:$0xff] %v2122_v39  ;;  %v3329_v40 = vpop.f32.mrb[68].mxu1 }
 0x3ab   : > { %v2137_v41 = vadd.f32 %v3329_v40, %v4604_v28  ;;  %v2131_v42 = vpop.f32.mrb[69].mxu1 }
 0x3ac   : > { %v2132_v43 = vadd.f32 %v4604_v28, %v2131_v42 }
 0x3ad   : > { %2411 = vst [vmem:[%s4608_s24 + $0x58] sm:$0xff] %v2137_v41 }
 0x3ae   : > { %2410 = vst [vmem:[%s4608_s24 + $0x50] sm:$0xff] %v2132_v43  ;;  %v3332_v44 = vpop.f32.mrb[70].mxu1 }
 0x3af   : > { %v2147_v45 = vadd.f32 %v3332_v44, %v4604_v28  ;;  %v2141_v46 = vpop.f32.mrb[71].mxu1 }
 0x3b0   : > { %v2142_v47 = vadd.f32 %v4604_v28, %v2141_v46 }
 0x3b1   : > { %2413 = vst [vmem:[%s4608_s24 + $0x68] sm:$0xff] %v2147_v45 }
 0x3b2   : > { %2412 = vst [vmem:[%s4608_s24 + $0x60] sm:$0xff] %v2142_v47  ;;  %v3335_v48 = vpop.f32.mrb[72].mxu1 }
 0x3b3   : > { %v2157_v49 = vadd.f32 %v3335_v48, %v4604_v28  ;;  %v2151_v50 = vpop.f32.mrb[73].mxu1 }
 0x3b4   : > { %v2152_v51 = vadd.f32 %v4604_v28, %v2151_v50 }
 0x3b5   : > { %2415 = vst [vmem:[%s4608_s24 + $0x78] sm:$0xff] %v2157_v49 }
 0x3b6   : > { %2414 = vst [vmem:[%s4608_s24 + $0x70] sm:$0xff] %v2152_v51  ;;  %v3338_v52 = vpop.f32.mrb[74].mxu1 }
 0x3b7   : > { %v2167_v53 = vadd.f32 %v3338_v52, %v4604_v28  ;;  %v2161_v54 = vpop.f32.mrb[75].mxu1 }
 0x3b8   : > { %v2162_v55 = vadd.f32 %v4604_v28, %v2161_v54 }
 0x3b9   : > { %2417 = vst [vmem:[%s4608_s24 + $0x88] sm:$0xff] %v2167_v53 }
 0x3ba   : > { %2416 = vst [vmem:[%s4608_s24 + $0x80] sm:$0xff] %v2162_v55  ;;  %v3341_v56 = vpop.f32.mrb[76].mxu1 }
 0x3bb   : > { %v2177_v57 = vadd.f32 %v3341_v56, %v4604_v28  ;;  %v2171_v58 = vpop.f32.mrb[77].mxu1 }
 0x3bc   : > { %v2172_v59 = vadd.f32 %v4604_v28, %v2171_v58 }
 0x3bd   : > { %2419 = vst [vmem:[%s4608_s24 + $0x98] sm:$0xff] %v2177_v57 }
 0x3be   : > { %2418 = vst [vmem:[%s4608_s24 + $0x90] sm:$0xff] %v2172_v59  ;;  %v3344_v60 = vpop.f32.mrb[78].mxu1 }
 0x3bf   : > { %v2187_v61 = vadd.f32 %v3344_v60, %v4604_v28  ;;  %v2181_v62 = vpop.f32.mrb[79].mxu1 }
 0x3c0   : > { %v2182_v63 = vadd.f32 %v4604_v28, %v2181_v62 }
 0x3c1   : > { %2421 = vst [vmem:[%s4608_s24 + $0xa8] sm:$0xff] %v2187_v61 }
 0x3c2   : > { %2420 = vst [vmem:[%s4608_s24 + $0xa0] sm:$0xff] %v2182_v63  ;;  %v3347_v0 = vpop.f32.mrb[80].mxu1 }
 0x3c3   : > { %v2197_v1 = vadd.f32 %v3347_v0, %v4604_v28  ;;  %v2191_v2 = vpop.f32.mrb[81].mxu1 }
 0x3c4   : > { %v2192_v3 = vadd.f32 %v4604_v28, %v2191_v2 }
 0x3c5   : > { %2423 = vst [vmem:[%s4608_s24 + $0xb8] sm:$0xff] %v2197_v1 }
 0x3c6   : > { %2422 = vst [vmem:[%s4608_s24 + $0xb0] sm:$0xff] %v2192_v3  ;;  %v3350_v4 = vpop.f32.mrb[82].mxu1 }
 0x3c7   : > { %v2207_v5 = vadd.f32 %v3350_v4, %v4604_v28  ;;  %v2201_v6 = vpop.f32.mrb[83].mxu1 }
 0x3c8   : > { %v2202_v7 = vadd.f32 %v4604_v28, %v2201_v6 }
 0x3c9   : > { %2425 = vst [vmem:[%s4608_s24 + $0xc8] sm:$0xff] %v2207_v5 }
 0x3ca   : > { %2424 = vst [vmem:[%s4608_s24 + $0xc0] sm:$0xff] %v2202_v7  ;;  %v3353_v8 = vpop.f32.mrb[84].mxu1 }
 0x3cb   : > { %v2217_v9 = vadd.f32 %v3353_v8, %v4604_v28  ;;  %v2211_v10 = vpop.f32.mrb[85].mxu1 }
 0x3cc   : > { %v2212_v11 = vadd.f32 %v4604_v28, %v2211_v10 }
 0x3cd   : > { %2427 = vst [vmem:[%s4608_s24 + $0xd8] sm:$0xff] %v2217_v9 }
 0x3ce   : > { %2426 = vst [vmem:[%s4608_s24 + $0xd0] sm:$0xff] %v2212_v11  ;;  %v3356_v12 = vpop.f32.mrb[86].mxu1 }
 0x3cf   : > { %v2227_v13 = vadd.f32 %v3356_v12, %v4604_v28  ;;  %v2221_v14 = vpop.f32.mrb[87].mxu1 }
 0x3d0   : > { %v2222_v15 = vadd.f32 %v4604_v28, %v2221_v14 }
 0x3d1   : > { %2429 = vst [vmem:[%s4608_s24 + $0xe8] sm:$0xff] %v2227_v13 }
 0x3d2   : > { %2428 = vst [vmem:[%s4608_s24 + $0xe0] sm:$0xff] %v2222_v15  ;;  %v3359_v16 = vpop.f32.mrb[88].mxu1 }
 0x3d3   : > { %v2237_v17 = vadd.f32 %v3359_v16, %v4604_v28  ;;  %v2231_v18 = vpop.f32.mrb[89].mxu1 }
 0x3d4   : > { %v2232_v19 = vadd.f32 %v4604_v28, %v2231_v18 }
 0x3d5   : > { %2431 = vst [vmem:[%s4608_s24 + $0xf8] sm:$0xff] %v2237_v17 }
 0x3d6   : > { %2430 = vst [vmem:[%s4608_s24 + $0xf0] sm:$0xff] %v2232_v19  ;;  %v3362_v20 = vpop.f32.mrb[90].mxu1 }
 0x3d7   : > { %v2247_v21 = vadd.f32 %v3362_v20, %v4604_v28  ;;  %v2241_v22 = vpop.f32.mrb[91].mxu1 }
 0x3d8   : > { %v2242_v23 = vadd.f32 %v4604_v28, %v2241_v22 }
 0x3d9   : > { %2433 = vst [vmem:[%s4608_s24 + $0x108] sm:$0xff] %v2247_v21 }
 0x3da   : > { %2432 = vst [vmem:[%s4608_s24 + $0x100] sm:$0xff] %v2242_v23  ;;  %v3365_v24 = vpop.f32.mrb[92].mxu1 }
 0x3db   : > { %v2257_v25 = vadd.f32 %v3365_v24, %v4604_v28  ;;  %v2251_v26 = vpop.f32.mrb[93].mxu1 }
 0x3dc   : > { %v2252_v27 = vadd.f32 %v4604_v28, %v2251_v26 }
 0x3dd   : > { %2435 = vst [vmem:[%s4608_s24 + $0x118] sm:$0xff] %v2257_v25 }
 0x3de   : > { %2434 = vst [vmem:[%s4608_s24 + $0x110] sm:$0xff] %v2252_v27  ;;  %v3368_v29 = vpop.f32.mrb[94].mxu1 }
 0x3df   : > { %v2267_v30 = vadd.f32 %v3368_v29, %v4604_v28  ;;  %v2261_v31 = vpop.f32.mrb[95].mxu1 }
 0x3e0   : > { %v2262_v32 = vadd.f32 %v4604_v28, %v2261_v31 }
 0x3e1   : > { %2437 = vst [vmem:[%s4608_s24 + $0x128] sm:$0xff] %v2267_v30 }
 0x3e2   : > { %2436 = vst [vmem:[%s4608_s24 + $0x120] sm:$0xff] %v2262_v32  ;;  %v3371_v33 = vpop.f32.mrb[96].mxu1 }
 0x3e3   : > { %v2277_v34 = vadd.f32 %v3371_v33, %v4604_v28  ;;  %v2271_v35 = vpop.f32.mrb[97].mxu1 }
 0x3e4   : > { %v2272_v36 = vadd.f32 %v4604_v28, %v2271_v35 }
 0x3e5   : > { %2439 = vst [vmem:[%s4608_s24 + $0x138] sm:$0xff] %v2277_v34 }
 0x3e6   : > { %2438 = vst [vmem:[%s4608_s24 + $0x130] sm:$0xff] %v2272_v36  ;;  %v3374_v37 = vpop.f32.mrb[98].mxu1 }
 0x3e7   : > { %v2287_v38 = vadd.f32 %v3374_v37, %v4604_v28  ;;  %v2281_v39 = vpop.f32.mrb[99].mxu1 }
 0x3e8   : > { %v2282_v40 = vadd.f32 %v4604_v28, %v2281_v39 }
 0x3e9   : > { %2441 = vst [vmem:[%s4608_s24 + $0x148] sm:$0xff] %v2287_v38 }
 0x3ea   : > { %2440 = vst [vmem:[%s4608_s24 + $0x140] sm:$0xff] %v2282_v40  ;;  %v3377_v41 = vpop.f32.mrb[100].mxu1 }
 0x3eb   : > { %v2297_v42 = vadd.f32 %v3377_v41, %v4604_v28  ;;  %v2291_v43 = vpop.f32.mrb[101].mxu1 }
 0x3ec   : > { %v2292_v44 = vadd.f32 %v4604_v28, %v2291_v43 }
 0x3ed   : > { %2443 = vst [vmem:[%s4608_s24 + $0x158] sm:$0xff] %v2297_v42 }
 0x3ee   : > { %2442 = vst [vmem:[%s4608_s24 + $0x150] sm:$0xff] %v2292_v44  ;;  %v3380_v45 = vpop.f32.mrb[102].mxu1 }
 0x3ef   : > { %v2307_v46 = vadd.f32 %v3380_v45, %v4604_v28  ;;  %v2301_v47 = vpop.f32.mrb[103].mxu1 }
 0x3f0   : > { %v2302_v48 = vadd.f32 %v4604_v28, %v2301_v47 }
 0x3f1   : > { %2445 = vst [vmem:[%s4608_s24 + $0x168] sm:$0xff] %v2307_v46 }
 0x3f2   : > { %2444 = vst [vmem:[%s4608_s24 + $0x160] sm:$0xff] %v2302_v48  ;;  %v3383_v49 = vpop.f32.mrb[104].mxu1 }
 0x3f3   : > { %v2317_v50 = vadd.f32 %v3383_v49, %v4604_v28  ;;  %v2311_v51 = vpop.f32.mrb[105].mxu1 }
 0x3f4   : > { %v2312_v52 = vadd.f32 %v4604_v28, %v2311_v51 }
 0x3f5   : > { %2447 = vst [vmem:[%s4608_s24 + $0x178] sm:$0xff] %v2317_v50 }
 0x3f6   : > { %2446 = vst [vmem:[%s4608_s24 + $0x170] sm:$0xff] %v2312_v52  ;;  %v3386_v53 = vpop.f32.mrb[106].mxu1 }
 0x3f7   : > { %v2327_v54 = vadd.f32 %v3386_v53, %v4604_v28  ;;  %v2321_v55 = vpop.f32.mrb[107].mxu1 }
 0x3f8   : > { %v2322_v56 = vadd.f32 %v4604_v28, %v2321_v55 }
 0x3f9   : > { %2449 = vst [vmem:[%s4608_s24 + $0x188] sm:$0xff] %v2327_v54 }
 0x3fa   : > { %2448 = vst [vmem:[%s4608_s24 + $0x180] sm:$0xff] %v2322_v56  ;;  %v3389_v57 = vpop.f32.mrb[108].mxu1 }
 0x3fb   : > { %v2337_v58 = vadd.f32 %v3389_v57, %v4604_v28  ;;  %v2331_v59 = vpop.f32.mrb[109].mxu1 }
 0x3fc   : > { %v2332_v60 = vadd.f32 %v4604_v28, %v2331_v59 }
 0x3fd   : > { %2451 = vst [vmem:[%s4608_s24 + $0x198] sm:$0xff] %v2337_v58 }
 0x3fe   : > { %2450 = vst [vmem:[%s4608_s24 + $0x190] sm:$0xff] %v2332_v60  ;;  %v3392_v61 = vpop.f32.mrb[110].mxu1 }
 0x3ff   : > { %v2347_v62 = vadd.f32 %v3392_v61, %v4604_v28  ;;  %v2341_v63 = vpop.f32.mrb[111].mxu1 }
 0x400   : > { %v2342_v0 = vadd.f32 %v4604_v28, %v2341_v63 }
 0x401   : > { %2453 = vst [vmem:[%s4608_s24 + $0x1a8] sm:$0xff] %v2347_v62 }
 0x402   : > { %2452 = vst [vmem:[%s4608_s24 + $0x1a0] sm:$0xff] %v2342_v0  ;;  %v3395_v1 = vpop.f32.mrb[112].mxu1 }
 0x403   : > { %v2357_v2 = vadd.f32 %v3395_v1, %v4604_v28  ;;  %v2351_v3 = vpop.f32.mrb[113].mxu1 }
 0x404   : > { %v2352_v4 = vadd.f32 %v4604_v28, %v2351_v3 }
 0x405   : > { %2455 = vst [vmem:[%s4608_s24 + $0x1b8] sm:$0xff] %v2357_v2 }
 0x406   : > { %2454 = vst [vmem:[%s4608_s24 + $0x1b0] sm:$0xff] %v2352_v4  ;;  %v3398_v5 = vpop.f32.mrb[114].mxu1 }
 0x407   : > { %v2367_v6 = vadd.f32 %v3398_v5, %v4604_v28  ;;  %v2361_v7 = vpop.f32.mrb[115].mxu1 }
 0x408   : > { %v2362_v8 = vadd.f32 %v4604_v28, %v2361_v7 }
 0x409   : > { %2457 = vst [vmem:[%s4608_s24 + $0x1c8] sm:$0xff] %v2367_v6 }
 0x40a   : > { %2456 = vst [vmem:[%s4608_s24 + $0x1c0] sm:$0xff] %v2362_v8  ;;  %v3401_v9 = vpop.f32.mrb[116].mxu1 }
 0x40b   : > { %v2377_v10 = vadd.f32 %v3401_v9, %v4604_v28  ;;  %v2371_v11 = vpop.f32.mrb[117].mxu1 }
 0x40c   : > { %v2372_v12 = vadd.f32 %v4604_v28, %v2371_v11 }
 0x40d   : > { %2459 = vst [vmem:[%s4608_s24 + $0x1d8] sm:$0xff] %v2377_v10 }
 0x40e   : > { %2458 = vst [vmem:[%s4608_s24 + $0x1d0] sm:$0xff] %v2372_v12  ;;  %v3404_v13 = vpop.f32.mrb[118].mxu1 }
 0x40f   : > { %v2387_v14 = vadd.f32 %v3404_v13, %v4604_v28  ;;  %v2381_v15 = vpop.f32.mrb[119].mxu1 }
 0x410   : > { %v2382_v16 = vadd.f32 %v4604_v28, %v2381_v15 }
 0x411   : > { %2461 = vst [vmem:[%s4608_s24 + $0x1e8] sm:$0xff] %v2387_v14 }
 0x412   : > { %2460 = vst [vmem:[%s4608_s24 + $0x1e0] sm:$0xff] %v2382_v16  ;;  %v3407_v17 = vpop.f32.mrb[120].mxu1 }
 0x413   : > { %v2397_v18 = vadd.f32 %v3407_v17, %v4604_v28  ;;  %v2391_v19 = vpop.f32.mrb[121].mxu1 }
 0x414   : > { %v2392_v20 = vadd.f32 %v4604_v28, %v2391_v19 }
 0x415   : > { %2463 = vst [vmem:[%s4608_s24 + $0x1f8] sm:$0xff] %v2397_v18 }
 0x416   : > { %2462 = vst [vmem:[%s4608_s24 + $0x1f0] sm:$0xff] %v2392_v20 }
 0x417   : > { %3958 = shalt.err (!%p3955_p3)
}
 0x418   : > { %s3959_s25 = scalar_lea.hbm %s4738_s17, 8192  ;;  %s3963_s29 = scalar_lea.hbm %s4797_s9, 16384 }
 0x419   : > { %p3960_p4 = scmp.ne.s32.totalorder %s4738_s17, %s3959_s25  ;;  %p3964_p9 = scmp.lt.u32.totalorder %s4738_s17, %s4797_s9 }
 0x41a   : > { %p3965_p10 = scmp.lt.u32.totalorder %s3963_s29, %s3959_s25  ;;  %p3967_p12 = scmp.lt.u32.totalorder %s3959_s25, %s4738_s17 }
 0x41b   : > { %p3961_p7 = pnand %p3960_p4, %p4100_p5 }
 0x41c   : > { %p3966_p11 = por %p3965_p10, %p3964_p9 }
 0x41d   : > { %p3962_p8 = pneg %p3961_p7 }
 0x41e   : > { %p3968_p13 = por %p3967_p12, %p3966_p11 }
 0x420   : > { %p3969_p0 = pnand %p3968_p13, %p3962_p8 }
 0x422   : > { %3972 = shalt.err (!%p3969_p0)
}
 0x423   : > { %s4010_s22 = smov 128   ;;  %s4011_s23 = smov 8  }
 0x424   : > { %3520 = dma.vmem_to_hbm [thread:$0]  (%p4100_p5), %s4740_s14, 8192, %s4738_s17, %s4747_s13, %s4010_s22, %s4010_s22, %s4011_s23  }
 0x425 PF: > { %p3526_p1 = scmp.ge.s32.totalorder %s4007_s12, 2  ;;  %s2493_s26 = sand.u32 1, %s3995_s30  }
 0x426   : > { %s2494_s27 = scalar_lea.sflag [#allocation3], %s2493_s26 }
 0x427   : > { %p3523_p2 = pnand %p3526_p1, %p4104_p6 }
 0x429   : > { %3990 = dma.done.wait (!%p3523_p2), %s2494_s27, 8192  }
 0x42a   : > { %3992 = vsyncadd (!%p3523_p2), %s2494_s27, 4294959104  ;;  %p19_p3 = scmp.ge.s32.totalorder %s4087_s15, 4   ;;  %s4800_s30 = smov %s3999_s10 }
 0x42b   : > { %s4801_s10 = smov %s4003_s11  ;;  %s4802_s11 = smov %s4098_s18 }
 0x42c   : > { %s4803_s12 = smov %s4087_s15  ;;  %21 = sbr.rel (!%p19_p3) target bundleno = 3 (0x3), region = 91 }
 0x433   :  { %2499 = vsyncpa [#allocation3], 1 }
 0x434   :  { %2501 = vsyncpa [#allocation3 + $0x1], 1 }

</bundles_post_ra>
